<compile_context>
chip_gen: v6e
topology: v6e:2x2x1
jax: 0.10.0
libtpu: 0.0.40
codegen_flags: <defaults>
</compile_context>

<pallas_src>
import math
from functools import partial

import numpy as np
import jax
import jax.numpy as jnp
from jax import lax
from jax.experimental import pallas as pl
from jax.experimental.pallas import tpu as pltpu

# HDHOGLayer defaults
ORIENTATIONS = 9
PIX_PER_CELL = (8, 8)
CELLS_PER_BLOCK = (3, 3)
_EPS = 1e-5  # skimage _hog_normalize_block eps (block_norm='L2')


def _hog_kernel(x_ref, pc_ref, pr_ref, rsum_ref, scat_ref, out_ref, *, img_w):
    """Fused HOG for one batch tile (Bt images packed along the lane axis).

    x_ref:    (1, H, Bt*W)        lane-packed grayscale images (f32, >= 0).
    pc_ref:   (Bt*W, Bt*ncw)      column cell pooling (1/cell-area folded in).
    pr_ref:   (O*nch, O*H)        row cell pooling over the O-stacked slab.
    rsum_ref: (3*O*nbr, O*nch)    block sum-of-squares row/orientation selector.
    scat_ref: (3*O*nbr, O*nch)    overlapping-block (ro, o, i) row gather.
    out_ref:  (1, 3, 3*O*nbr, Bt*ncw)  per-co normalized block values.
    """
    O = ORIENTATIONS
    bc = CELLS_PER_BLOCK[1]
    _, H, BtW = x_ref.shape

    x = x_ref[0]                                   # (H, Bt*W)
    sq = jnp.sqrt(x)                               # transform_sqrt=True

    # --- gradients (skimage central differences, zero at image borders) ------
    zrow = jnp.zeros((1, BtW), jnp.float32)
    g_row = jnp.concatenate([zrow, sq[2:, :] - sq[:-2, :], zrow], axis=0)

    left = pltpu.roll(sq, BtW - 1, 1)              # left[:, j]  = sq[:, j+1]
    right = pltpu.roll(sq, 1, 1)                   # right[:, j] = sq[:, j-1]
    cid = lax.broadcasted_iota(jnp.int32, (H, BtW), 1)
    cmod = lax.rem(cid, img_w)
    edge = (cmod == 0) | (cmod == img_w - 1)       # first/last column per image
    g_col = jnp.where(edge, 0.0, left - right)     # (wrap columns are masked)

    mag = jnp.sqrt(g_row * g_row + g_col * g_col)

    # --- orientation binning: monotone half-plane tests, bin o = [20o, 20(o+1))
    neg = g_row < 0.0
    gr = jnp.abs(g_row)                            # fold angle into [0, 180)
    gc = jnp.where(neg, -g_col, g_col)
    nz = g_row != 0.0                              # g_row == 0 -> angle 0/180 -> bin 0
    ind = []
    for b in range(1, O):
        a = math.radians(180.0 / O * b)
        ind.append(((math.cos(a) * gr - math.sin(a) * gc) >= 0.0) & nz)
    masks = ([~ind[0]]
             + [ind[o - 1] & ~ind[o] for o in range(1, O - 1)]
             + [ind[O - 2]])

    # binned magnitudes stacked along the sublane axis: (O*H, Bt*W)
    binned = jnp.concatenate([jnp.where(m, mag, 0.0) for m in masks], axis=0)

    # --- cell pooling: two plain 2-D MXU matmuls (1/64 folded into pc) -------
    colp = jnp.dot(binned, pc_ref[...], preferred_element_type=jnp.float32)  # (O*H, Bt*ncw)
    hist = jnp.dot(pr_ref[...], colp, preferred_element_type=jnp.float32)    # (O*nch, Bt*ncw)

    def shl(a, s):
        # shift columns left by s (zero fill); columns that leak across an
        # image boundary are only the ones the wrapper discards (j >= nbc).
        if s == 0:
            return a
        return jnp.concatenate(
            [a[:, s:], jnp.zeros((a.shape[0], s), a.dtype)], axis=1)

    # --- block L2 normalizers: 3x3xO sum of squares --------------------------
    rb = jnp.dot(rsum_ref[...], hist * hist,
                 preferred_element_type=jnp.float32)                         # (3*O*nbr, Bt*ncw)
    den = rb + shl(rb, 1) + shl(rb, 2)
    inv = lax.rsqrt(den + _EPS * _EPS)

    # --- overlapping-block gather + normalize --------------------------------
    gsel = jnp.dot(scat_ref[...], hist,
                   preferred_element_type=jnp.float32)                       # (3*O*nbr, Bt*ncw)
    for co in range(bc):
        out_ref[0, co] = shl(gsel, co) * inv


def _build_hog_constants(H, W, Bt):
    """Host-side constant pooling / selector matrices (all tiny, O(cells))."""
    O = ORIENTATIONS
    cr, cc = PIX_PER_CELL
    br, bc = CELLS_PER_BLOCK
    nch, ncw = H // cr, W // cc
    nbr, nbc = nch - br + 1, ncw - bc + 1
    BtW, NC = Bt * W, Bt * ncw
    M3 = br * O * nbr

    # column cell pooling over the lane-packed axis; 1/(cell area) folded in.
    pc = (np.arange(BtW)[:, None] // cc == np.arange(NC)[None, :])
    pc = pc.astype(np.float32) / float(cr * cc)
    # row cell pooling over the orientation-stacked sublane axis.
    pr = (np.arange(O * H)[None, :] // cr ==
          np.arange(O * nch)[:, None]).astype(np.float32)
    # block sum-of-squares selector (3 cell rows x all orientations), replicated
    # to the (ro, o, i) output-row layout, and the block-row/orientation gather.
    rsum = np.zeros((M3, O * nch), np.float32)
    scat = np.zeros((M3, O * nch), np.float32)
    for ro in range(br):
        for o in range(O):
            for i in range(nbr):
                m = (ro * O + o) * nbr + i
                scat[m, o * nch + i + ro] = 1.0
                for oo in range(O):
                    rsum[m, oo * nch + i: oo * nch + i + br] = 1.0
    return jnp.asarray(pc), jnp.asarray(pr), jnp.asarray(rsum), jnp.asarray(scat)


@partial(jax.jit, static_argnames=("batch_tile",))
def hog_features(x, batch_tile=4):
    """x: (B, 1, H, W) non-negative float images. Returns (B, F) float32 HOG features.

    Pick batch_tile so batch_tile*W is a multiple of 128 (lane-dense) and
    batch_tile <= ceil(B/2) (keeps >= 2 grid steps for v7x's two TensorCores).
    """
    assert x.ndim == 4, "Input tensor must be 4-dimensional (batch, channels, H, W)"
    if x.shape[1] != 1:
        raise ValueError("HOG expects grayscale images with 1 channel")
    B, _, H, W = x.shape
    O = ORIENTATIONS
    cr, cc = PIX_PER_CELL
    br, bc = CELLS_PER_BLOCK
    assert H % cr == 0 and W % cc == 0, "H, W must be multiples of pixels_per_cell"
    nch, ncw = H // cr, W // cc
    nbr, nbc = nch - br + 1, ncw - bc + 1
    assert nbr > 0 and nbc > 0, "image too small for cells_per_block"
    F = nbr * nbc * br * bc * O

    Bt = max(1, min(B, int(batch_tile)))
    nsteps = -(-B // Bt)
    Bp = nsteps * Bt
    M3 = br * O * nbr
    NC = Bt * ncw

    pc, pr, rsum, scat = _build_hog_constants(H, W, Bt)

    img = x[:, 0].astype(jnp.float32)
    if Bp != B:
        img = jnp.concatenate([img, jnp.zeros((Bp - B, H, W), jnp.float32)], axis=0)
    # pack each batch tile side-by-side along the lane axis: (nsteps, H, Bt*W)
    xpk = img.reshape(nsteps, Bt, H, W).transpose(0, 2, 1, 3).reshape(nsteps, H, Bt * W)

    out = pl.pallas_call(
        partial(_hog_kernel, img_w=W),
        out_shape=jax.ShapeDtypeStruct((nsteps, bc, M3, NC), jnp.float32),
        grid=(nsteps,),
        in_specs=[
            pl.BlockSpec((1, H, Bt * W), lambda i: (i, 0, 0)),
            pl.BlockSpec(pc.shape, lambda i: (0, 0)),
            pl.BlockSpec(pr.shape, lambda i: (0, 0)),
            pl.BlockSpec(rsum.shape, lambda i: (0, 0)),
            pl.BlockSpec(scat.shape, lambda i: (0, 0)),
        ],
        out_specs=pl.BlockSpec((1, bc, M3, NC), lambda i: (i, 0, 0, 0)),
        compiler_params=pltpu.CompilerParams(
            dimension_semantics=("parallel",),
            vmem_limit_bytes=48 * 1024 * 1024,
        ),
    )(xpk, pc, pr, rsum, scat)

    # out[step, co, (ro*O + o)*nbr + i, b*ncw + c]  ->  skimage feature order
    # f = ((((i*nbc + j)*br + ro)*bc + co)*O + o); pure layout reshuffle in XLA.
    feats = out.reshape(nsteps, bc, br, O, nbr, Bt, ncw)
    feats = feats.transpose(0, 5, 4, 6, 2, 1, 3)          # (step, b, i, c, ro, co, o)
    feats = feats[:, :, :, :nbc]
    return feats.reshape(Bp, F)[:B]                       # feature_vector=True


def _hog_reference(x):
    """Pure-JAX (non-Pallas) reference with identical binning/normalization math."""
    O = ORIENTATIONS
    cr, cc = PIX_PER_CELL
    br, bc = CELLS_PER_BLOCK
    B, _, H, W = x.shape
    nch, ncw = H // cr, W // cc
    nbr, nbc = nch - br + 1, ncw - bc + 1

    img = jnp.sqrt(x[:, 0].astype(jnp.float32))
    g_row = jnp.zeros_like(img).at[:, 1:-1, :].set(img[:, 2:, :] - img[:, :-2, :])
    g_col = jnp.zeros_like(img).at[:, :, 1:-1].set(img[:, :, 2:] - img[:, :, :-2])
    mag = jnp.sqrt(g_row * g_row + g_col * g_col)
    flip = g_row < 0.0
    gr = jnp.where(flip, -g_row, g_row)
    gc = jnp.where(flip, -g_col, g_col)
    bidx = jnp.zeros(img.shape, jnp.int32)
    for b in range(1, O):
        a = math.radians(180.0 / O * b)
        bidx = bidx + (math.cos(a) * gr - math.sin(a) * gc >= 0.0).astype(jnp.int32)
    bidx = jnp.where(g_row == 0.0, 0, bidx)

    onehot = (bidx[..., None] == jnp.arange(O)).astype(jnp.float32) * mag[..., None]
    cells = onehot.reshape(B, nch, cr, ncw, cc, O).sum(axis=(2, 4)) / float(cr * cc)

    feats = []
    for i in range(nbr):
        for j in range(nbc):
            blk = cells[:, i:i + br, j:j + bc, :]          # (B, br, bc, O)
            den = jnp.sqrt(jnp.sum(blk * blk, axis=(1, 2, 3), keepdims=True)
                           + _EPS * _EPS)
            feats.append((blk / den).reshape(B, -1))
    return jnp.concatenate(feats, axis=1)


if __name__ == "__main__":
    key = jax.random.PRNGKey(0)
    # 8 images of 32x32 -> 4x4 cells -> 2x2 blocks of 3x3 cells -> 324 features/image.
    # values in [0, 1): transform_sqrt=True requires non-negative pixels.
    x = jax.random.uniform(key, (8, 1, 32, 32), dtype=jnp.float32)

    # batch_tile=4: 4*32 = 128 lanes per vreg row, and 2 grid steps (both v7x TCs busy).
    feats = hog_features(x, batch_tile=4)
    feats = jax.block_until_ready(feats)

    assert feats.shape == (8, 2 * 2 * 3 * 3 * ORIENTATIONS), feats.shape
    assert feats.dtype == jnp.float32
    ref = _hog_reference(x)
    max_diff = float(jnp.max(jnp.abs(feats - ref)))
    # tolerance covers the MXU's default (bf16-pass) rounding in the pooling matmuls;
    # TODO(synk): pass precision=lax.Precision.HIGHEST on the dots if exact parity is needed.
    assert bool(jnp.allclose(feats, ref, rtol=5e-3, atol=5e-3)), max_diff
    print("KERNEL_OK")
</pallas_src>

<mosaic_0001>
module attributes {stable_mosaic.version = 11 : i64} {
  func.func @_hog_kernel(%arg0: i32, %arg1: memref<1x32x128xf32, #tpu.memory_space<vmem>>, %arg2: memref<128x16xf32, #tpu.memory_space<vmem>>, %arg3: memref<36x288xf32, #tpu.memory_space<vmem>>, %arg4: memref<54x36xf32, #tpu.memory_space<vmem>>, %arg5: memref<54x36xf32, #tpu.memory_space<vmem>>, %arg6: memref<1x3x54x16xf32, #tpu.memory_space<vmem>>) attributes {dimension_semantics = [#tpu.dimension_semantics<parallel>], iteration_bounds = array<i64: 2>, scalar_prefetch = 0 : i64, scratch_operands = 0 : i64, tpu.core_type = #tpu.core_type<tc>, window_params = [{transform_indices = @transform_0, window_bounds = array<i64: 1, 32, 128>}, {pipeline_mode = #tpu.pipeline_mode<synchronous>, transform_indices = @transform_1, window_bounds = array<i64: 128, 16>}, {pipeline_mode = #tpu.pipeline_mode<synchronous>, transform_indices = @transform_2, window_bounds = array<i64: 36, 288>}, {pipeline_mode = #tpu.pipeline_mode<synchronous>, transform_indices = @transform_3, window_bounds = array<i64: 54, 36>}, {pipeline_mode = #tpu.pipeline_mode<synchronous>, transform_indices = @transform_4, window_bounds = array<i64: 54, 36>}, {transform_indices = @transform_5, window_bounds = array<i64: 1, 3, 54, 16>}]} {
    %c0 = arith.constant 0 : index
    %c0_0 = arith.constant 0 : index
    %c0_1 = arith.constant 0 : index
    %0 = vector.load %arg1[%c0, %c0_0, %c0_1] : memref<1x32x128xf32, #tpu.memory_space<vmem>>, vector<1x32x128xf32>
    %1 = vector.shape_cast %0 : vector<1x32x128xf32> to vector<32x128xf32>
    %2 = math.sqrt %1 : vector<32x128xf32>
    %cst = arith.constant 0.000000e+00 : f32
    %3 = vector.broadcast %cst : f32 to vector<1x128xf32>
    %4 = vector.extract_strided_slice %2 {offsets = [2, 0], sizes = [30, 128], strides = [1, 1]} : vector<32x128xf32> to vector<30x128xf32>
    %5 = vector.extract_strided_slice %2 {offsets = [0, 0], sizes = [30, 128], strides = [1, 1]} : vector<32x128xf32> to vector<30x128xf32>
    %6 = arith.subf %4, %5 : vector<30x128xf32>
    %7 = tpu.concatenate %3, %6, %3 in 0 : vector<1x128xf32>, vector<30x128xf32>, vector<1x128xf32> -> vector<32x128xf32>
    %c127_i32 = arith.constant 127 : i32
    %8 = tpu.dynamic_rotate %2 by %c127_i32 dim 1 : vector<32x128xf32>, i32 -> vector<32x128xf32>
    %c1_i32 = arith.constant 1 : i32
    %9 = tpu.dynamic_rotate %2 by %c1_i32 dim 1 : vector<32x128xf32>, i32 -> vector<32x128xf32>
    %10 = tpu.iota {dimensions = array<i32: 1>} : vector<32x128xi32>
    %c32_i32 = arith.constant 32 : i32
    %11 = vector.broadcast %c32_i32 : i32 to vector<32x128xi32>
    %12 = arith.remsi %10, %11 : vector<32x128xi32>
    %c0_i32 = arith.constant 0 : i32
    %13 = vector.broadcast %c0_i32 : i32 to vector<32x128xi32>
    %14 = arith.cmpi eq, %12, %13 : vector<32x128xi32>
    %c31_i32 = arith.constant 31 : i32
    %15 = vector.broadcast %c31_i32 : i32 to vector<32x128xi32>
    %16 = arith.cmpi eq, %12, %15 : vector<32x128xi32>
    %17 = arith.ori %14, %16 : vector<32x128xi1>
    %18 = arith.subf %8, %9 : vector<32x128xf32>
    %cst_2 = arith.constant 0.000000e+00 : f32
    %19 = vector.broadcast %cst_2 : f32 to vector<32x128xf32>
    %20 = arith.select %17, %19, %18 : vector<32x128xi1>, vector<32x128xf32>
    %21 = arith.mulf %7, %7 : vector<32x128xf32>
    %22 = arith.mulf %20, %20 : vector<32x128xf32>
    %23 = arith.addf %21, %22 : vector<32x128xf32>
    %24 = math.sqrt %23 : vector<32x128xf32>
    %cst_3 = arith.constant 0.000000e+00 : f32
    %25 = vector.broadcast %cst_3 : f32 to vector<32x128xf32>
    %26 = arith.cmpf olt, %7, %25 : vector<32x128xf32>
    %27 = math.absf %7 : vector<32x128xf32>
    %cst_4 = arith.constant 0.000000e+00 : f32
    %28 = vector.broadcast %cst_4 : f32 to vector<32x128xf32>
    %29 = arith.subf %28, %20 : vector<32x128xf32>
    %30 = arith.select %26, %29, %20 : vector<32x128xi1>, vector<32x128xf32>
    %cst_5 = arith.constant 0.000000e+00 : f32
    %31 = vector.broadcast %cst_5 : f32 to vector<32x128xf32>
    %32 = arith.cmpf one, %7, %31 : vector<32x128xf32>
    %cst_6 = arith.constant 0.939692616 : f32
    %33 = vector.broadcast %cst_6 : f32 to vector<32x128xf32>
    %34 = arith.mulf %33, %27 : vector<32x128xf32>
    %cst_7 = arith.constant 0.342020154 : f32
    %35 = vector.broadcast %cst_7 : f32 to vector<32x128xf32>
    %36 = arith.mulf %35, %30 : vector<32x128xf32>
    %37 = arith.subf %34, %36 : vector<32x128xf32>
    %cst_8 = arith.constant 0.000000e+00 : f32
    %38 = vector.broadcast %cst_8 : f32 to vector<32x128xf32>
    %39 = arith.cmpf oge, %37, %38 : vector<32x128xf32>
    %40 = arith.andi %39, %32 : vector<32x128xi1>
    %cst_9 = arith.constant 0.766044437 : f32
    %41 = vector.broadcast %cst_9 : f32 to vector<32x128xf32>
    %42 = arith.mulf %41, %27 : vector<32x128xf32>
    %cst_10 = arith.constant 0.642787635 : f32
    %43 = vector.broadcast %cst_10 : f32 to vector<32x128xf32>
    %44 = arith.mulf %43, %30 : vector<32x128xf32>
    %45 = arith.subf %42, %44 : vector<32x128xf32>
    %cst_11 = arith.constant 0.000000e+00 : f32
    %46 = vector.broadcast %cst_11 : f32 to vector<32x128xf32>
    %47 = arith.cmpf oge, %45, %46 : vector<32x128xf32>
    %48 = arith.andi %47, %32 : vector<32x128xi1>
    %cst_12 = arith.constant 5.000000e-01 : f32
    %49 = vector.broadcast %cst_12 : f32 to vector<32x128xf32>
    %50 = arith.mulf %49, %27 : vector<32x128xf32>
    %cst_13 = arith.constant 0.866025388 : f32
    %51 = vector.broadcast %cst_13 : f32 to vector<32x128xf32>
    %52 = arith.mulf %51, %30 : vector<32x128xf32>
    %53 = arith.subf %50, %52 : vector<32x128xf32>
    %cst_14 = arith.constant 0.000000e+00 : f32
    %54 = vector.broadcast %cst_14 : f32 to vector<32x128xf32>
    %55 = arith.cmpf oge, %53, %54 : vector<32x128xf32>
    %56 = arith.andi %55, %32 : vector<32x128xi1>
    %cst_15 = arith.constant 0.173648179 : f32
    %57 = vector.broadcast %cst_15 : f32 to vector<32x128xf32>
    %58 = arith.mulf %57, %27 : vector<32x128xf32>
    %cst_16 = arith.constant 0.984807729 : f32
    %59 = vector.broadcast %cst_16 : f32 to vector<32x128xf32>
    %60 = arith.mulf %59, %30 : vector<32x128xf32>
    %61 = arith.subf %58, %60 : vector<32x128xf32>
    %cst_17 = arith.constant 0.000000e+00 : f32
    %62 = vector.broadcast %cst_17 : f32 to vector<32x128xf32>
    %63 = arith.cmpf oge, %61, %62 : vector<32x128xf32>
    %64 = arith.andi %63, %32 : vector<32x128xi1>
    %cst_18 = arith.constant -0.173648179 : f32
    %65 = vector.broadcast %cst_18 : f32 to vector<32x128xf32>
    %66 = arith.mulf %65, %27 : vector<32x128xf32>
    %cst_19 = arith.constant 0.984807729 : f32
    %67 = vector.broadcast %cst_19 : f32 to vector<32x128xf32>
    %68 = arith.mulf %67, %30 : vector<32x128xf32>
    %69 = arith.subf %66, %68 : vector<32x128xf32>
    %cst_20 = arith.constant 0.000000e+00 : f32
    %70 = vector.broadcast %cst_20 : f32 to vector<32x128xf32>
    %71 = arith.cmpf oge, %69, %70 : vector<32x128xf32>
    %72 = arith.andi %71, %32 : vector<32x128xi1>
    %cst_21 = arith.constant -5.000000e-01 : f32
    %73 = vector.broadcast %cst_21 : f32 to vector<32x128xf32>
    %74 = arith.mulf %73, %27 : vector<32x128xf32>
    %cst_22 = arith.constant 0.866025388 : f32
    %75 = vector.broadcast %cst_22 : f32 to vector<32x128xf32>
    %76 = arith.mulf %75, %30 : vector<32x128xf32>
    %77 = arith.subf %74, %76 : vector<32x128xf32>
    %cst_23 = arith.constant 0.000000e+00 : f32
    %78 = vector.broadcast %cst_23 : f32 to vector<32x128xf32>
    %79 = arith.cmpf oge, %77, %78 : vector<32x128xf32>
    %80 = arith.andi %79, %32 : vector<32x128xi1>
    %cst_24 = arith.constant -0.766044437 : f32
    %81 = vector.broadcast %cst_24 : f32 to vector<32x128xf32>
    %82 = arith.mulf %81, %27 : vector<32x128xf32>
    %cst_25 = arith.constant 0.642787635 : f32
    %83 = vector.broadcast %cst_25 : f32 to vector<32x128xf32>
    %84 = arith.mulf %83, %30 : vector<32x128xf32>
    %85 = arith.subf %82, %84 : vector<32x128xf32>
    %cst_26 = arith.constant 0.000000e+00 : f32
    %86 = vector.broadcast %cst_26 : f32 to vector<32x128xf32>
    %87 = arith.cmpf oge, %85, %86 : vector<32x128xf32>
    %88 = arith.andi %87, %32 : vector<32x128xi1>
    %cst_27 = arith.constant -0.939692616 : f32
    %89 = vector.broadcast %cst_27 : f32 to vector<32x128xf32>
    %90 = arith.mulf %89, %27 : vector<32x128xf32>
    %cst_28 = arith.constant 0.342020154 : f32
    %91 = vector.broadcast %cst_28 : f32 to vector<32x128xf32>
    %92 = arith.mulf %91, %30 : vector<32x128xf32>
    %93 = arith.subf %90, %92 : vector<32x128xf32>
    %cst_29 = arith.constant 0.000000e+00 : f32
    %94 = vector.broadcast %cst_29 : f32 to vector<32x128xf32>
    %95 = arith.cmpf oge, %93, %94 : vector<32x128xf32>
    %96 = arith.andi %95, %32 : vector<32x128xi1>
    %cst_30 = arith.constant dense<true> : vector<32x128xi1>
    %97 = arith.xori %40, %cst_30 : vector<32x128xi1>
    %cst_31 = arith.constant dense<true> : vector<32x128xi1>
    %98 = arith.xori %48, %cst_31 : vector<32x128xi1>
    %99 = arith.andi %40, %98 : vector<32x128xi1>
    %cst_32 = arith.constant dense<true> : vector<32x128xi1>
    %100 = arith.xori %56, %cst_32 : vector<32x128xi1>
    %101 = arith.andi %48, %100 : vector<32x128xi1>
    %cst_33 = arith.constant dense<true> : vector<32x128xi1>
    %102 = arith.xori %64, %cst_33 : vector<32x128xi1>
    %103 = arith.andi %56, %102 : vector<32x128xi1>
    %cst_34 = arith.constant dense<true> : vector<32x128xi1>
    %104 = arith.xori %72, %cst_34 : vector<32x128xi1>
    %105 = arith.andi %64, %104 : vector<32x128xi1>
    %cst_35 = arith.constant dense<true> : vector<32x128xi1>
    %106 = arith.xori %80, %cst_35 : vector<32x128xi1>
    %107 = arith.andi %72, %106 : vector<32x128xi1>
    %cst_36 = arith.constant dense<true> : vector<32x128xi1>
    %108 = arith.xori %88, %cst_36 : vector<32x128xi1>
    %109 = arith.andi %80, %108 : vector<32x128xi1>
    %cst_37 = arith.constant dense<true> : vector<32x128xi1>
    %110 = arith.xori %96, %cst_37 : vector<32x128xi1>
    %111 = arith.andi %88, %110 : vector<32x128xi1>
    %cst_38 = arith.constant 0.000000e+00 : f32
    %112 = vector.broadcast %cst_38 : f32 to vector<32x128xf32>
    %113 = arith.select %97, %24, %112 : vector<32x128xi1>, vector<32x128xf32>
    %cst_39 = arith.constant 0.000000e+00 : f32
    %114 = vector.broadcast %cst_39 : f32 to vector<32x128xf32>
    %115 = arith.select %99, %24, %114 : vector<32x128xi1>, vector<32x128xf32>
    %cst_40 = arith.constant 0.000000e+00 : f32
    %116 = vector.broadcast %cst_40 : f32 to vector<32x128xf32>
    %117 = arith.select %101, %24, %116 : vector<32x128xi1>, vector<32x128xf32>
    %cst_41 = arith.constant 0.000000e+00 : f32
    %118 = vector.broadcast %cst_41 : f32 to vector<32x128xf32>
    %119 = arith.select %103, %24, %118 : vector<32x128xi1>, vector<32x128xf32>
    %cst_42 = arith.constant 0.000000e+00 : f32
    %120 = vector.broadcast %cst_42 : f32 to vector<32x128xf32>
    %121 = arith.select %105, %24, %120 : vector<32x128xi1>, vector<32x128xf32>
    %cst_43 = arith.constant 0.000000e+00 : f32
    %122 = vector.broadcast %cst_43 : f32 to vector<32x128xf32>
    %123 = arith.select %107, %24, %122 : vector<32x128xi1>, vector<32x128xf32>
    %cst_44 = arith.constant 0.000000e+00 : f32
    %124 = vector.broadcast %cst_44 : f32 to vector<32x128xf32>
    %125 = arith.select %109, %24, %124 : vector<32x128xi1>, vector<32x128xf32>
    %cst_45 = arith.constant 0.000000e+00 : f32
    %126 = vector.broadcast %cst_45 : f32 to vector<32x128xf32>
    %127 = arith.select %111, %24, %126 : vector<32x128xi1>, vector<32x128xf32>
    %cst_46 = arith.constant 0.000000e+00 : f32
    %128 = vector.broadcast %cst_46 : f32 to vector<32x128xf32>
    %129 = arith.select %96, %24, %128 : vector<32x128xi1>, vector<32x128xf32>
    %130 = tpu.concatenate %113, %115, %117, %119, %121, %123, %125, %127, %129 in 0 : vector<32x128xf32>, vector<32x128xf32>, vector<32x128xf32>, vector<32x128xf32>, vector<32x128xf32>, vector<32x128xf32>, vector<32x128xf32>, vector<32x128xf32>, vector<32x128xf32> -> vector<288x128xf32>
    %c0_47 = arith.constant 0 : index
    %c0_48 = arith.constant 0 : index
    %131 = vector.load %arg2[%c0_47, %c0_48] : memref<128x16xf32, #tpu.memory_space<vmem>>, vector<128x16xf32>
    %cst_49 = arith.constant dense<0.000000e+00> : vector<288x16xf32>
    %132 = tpu.matmul %130, %131, %cst_49 {dimension_numbers = #tpu.dot_dimension_numbers<[1], [0], [0], [1], [0, 0, 1, 1], [], []>} : vector<288x128xf32>, vector<128x16xf32>, vector<288x16xf32> -> vector<288x16xf32>
    %c0_50 = arith.constant 0 : index
    %c0_51 = arith.constant 0 : index
    %133 = vector.load %arg3[%c0_50, %c0_51] : memref<36x288xf32, #tpu.memory_space<vmem>>, vector<36x288xf32>
    %cst_52 = arith.constant dense<0.000000e+00> : vector<36x16xf32>
    %134 = tpu.matmul %133, %132, %cst_52 {dimension_numbers = #tpu.dot_dimension_numbers<[1], [0], [0], [1], [0, 0, 1, 1], [], []>} : vector<36x288xf32>, vector<288x16xf32>, vector<36x16xf32> -> vector<36x16xf32>
    %c0_53 = arith.constant 0 : index
    %c0_54 = arith.constant 0 : index
    %135 = vector.load %arg4[%c0_53, %c0_54] : memref<54x36xf32, #tpu.memory_space<vmem>>, vector<54x36xf32>
    %136 = arith.mulf %134, %134 : vector<36x16xf32>
    %cst_55 = arith.constant dense<0.000000e+00> : vector<54x16xf32>
    %137 = tpu.matmul %135, %136, %cst_55 {dimension_numbers = #tpu.dot_dimension_numbers<[1], [0], [0], [1], [0, 0, 1, 1], [], []>} : vector<54x36xf32>, vector<36x16xf32>, vector<54x16xf32> -> vector<54x16xf32>
    %138 = vector.extract_strided_slice %137 {offsets = [0, 1], sizes = [54, 15], strides = [1, 1]} : vector<54x16xf32> to vector<54x15xf32>
    %cst_56 = arith.constant 0.000000e+00 : f32
    %139 = vector.broadcast %cst_56 : f32 to vector<54x1xf32>
    %140 = tpu.concatenate %138, %139 in 1 : vector<54x15xf32>, vector<54x1xf32> -> vector<54x16xf32>
    %141 = arith.addf %137, %140 : vector<54x16xf32>
    %142 = vector.extract_strided_slice %137 {offsets = [0, 2], sizes = [54, 14], strides = [1, 1]} : vector<54x16xf32> to vector<54x14xf32>
    %cst_57 = arith.constant 0.000000e+00 : f32
    %143 = vector.broadcast %cst_57 : f32 to vector<54x2xf32>
    %144 = tpu.concatenate %142, %143 in 1 : vector<54x14xf32>, vector<54x2xf32> -> vector<54x16xf32>
    %145 = arith.addf %141, %144 : vector<54x16xf32>
    %cst_58 = arith.constant 1.000000e-10 : f32
    %146 = vector.broadcast %cst_58 : f32 to vector<54x16xf32>
    %147 = arith.addf %145, %146 : vector<54x16xf32>
    %148 = math.rsqrt %147 : vector<54x16xf32>
    %c0_59 = arith.constant 0 : index
    %c0_60 = arith.constant 0 : index
    %149 = vector.load %arg5[%c0_59, %c0_60] : memref<54x36xf32, #tpu.memory_space<vmem>>, vector<54x36xf32>
    %cst_61 = arith.constant dense<0.000000e+00> : vector<54x16xf32>
    %150 = tpu.matmul %149, %134, %cst_61 {dimension_numbers = #tpu.dot_dimension_numbers<[1], [0], [0], [1], [0, 0, 1, 1], [], []>} : vector<54x36xf32>, vector<36x16xf32>, vector<54x16xf32> -> vector<54x16xf32>
    %151 = arith.mulf %150, %148 : vector<54x16xf32>
    %c0_62 = arith.constant 0 : index
    %c0_63 = arith.constant 0 : index
    %c0_64 = arith.constant 0 : index
    %c0_65 = arith.constant 0 : index
    %152 = vector.load %arg6[%c0_62, %c0_63, %c0_64, %c0_65] : memref<1x3x54x16xf32, #tpu.memory_space<vmem>>, vector<1x1x54x16xf32>
    %153 = vector.shape_cast %152 : vector<1x1x54x16xf32> to vector<54x16xf32>
    %154 = vector.shape_cast %151 : vector<54x16xf32> to vector<1x1x54x16xf32>
    tpu.vector_store %arg6[%c0_62, %c0_63, %c0_64, %c0_65], %154 {strides = array<i32>} : memref<1x3x54x16xf32, #tpu.memory_space<vmem>>, vector<1x1x54x16xf32>,
    %155 = vector.extract_strided_slice %150 {offsets = [0, 1], sizes = [54, 15], strides = [1, 1]} : vector<54x16xf32> to vector<54x15xf32>
    %cst_66 = arith.constant 0.000000e+00 : f32
    %156 = vector.broadcast %cst_66 : f32 to vector<54x1xf32>
    %157 = tpu.concatenate %155, %156 in 1 : vector<54x15xf32>, vector<54x1xf32> -> vector<54x16xf32>
    %158 = arith.mulf %157, %148 : vector<54x16xf32>
    %c0_67 = arith.constant 0 : index
    %c1 = arith.constant 1 : index
    %c0_68 = arith.constant 0 : index
    %c0_69 = arith.constant 0 : index
    %159 = vector.load %arg6[%c0_67, %c1, %c0_68, %c0_69] : memref<1x3x54x16xf32, #tpu.memory_space<vmem>>, vector<1x1x54x16xf32>
    %160 = vector.shape_cast %159 : vector<1x1x54x16xf32> to vector<54x16xf32>
    %161 = vector.shape_cast %158 : vector<54x16xf32> to vector<1x1x54x16xf32>
    tpu.vector_store %arg6[%c0_67, %c1, %c0_68, %c0_69], %161 {strides = array<i32>} : memref<1x3x54x16xf32, #tpu.memory_space<vmem>>, vector<1x1x54x16xf32>,
    %162 = vector.extract_strided_slice %150 {offsets = [0, 2], sizes = [54, 14], strides = [1, 1]} : vector<54x16xf32> to vector<54x14xf32>
    %cst_70 = arith.constant 0.000000e+00 : f32
    %163 = vector.broadcast %cst_70 : f32 to vector<54x2xf32>
    %164 = tpu.concatenate %162, %163 in 1 : vector<54x14xf32>, vector<54x2xf32> -> vector<54x16xf32>
    %165 = arith.mulf %164, %148 : vector<54x16xf32>
    %c0_71 = arith.constant 0 : index
    %c2 = arith.constant 2 : index
    %c0_72 = arith.constant 0 : index
    %c0_73 = arith.constant 0 : index
    %166 = vector.load %arg6[%c0_71, %c2, %c0_72, %c0_73] : memref<1x3x54x16xf32, #tpu.memory_space<vmem>>, vector<1x1x54x16xf32>
    %167 = vector.shape_cast %166 : vector<1x1x54x16xf32> to vector<54x16xf32>
    %168 = vector.shape_cast %165 : vector<54x16xf32> to vector<1x1x54x16xf32>
    tpu.vector_store %arg6[%c0_71, %c2, %c0_72, %c0_73], %168 {strides = array<i32>} : memref<1x3x54x16xf32, #tpu.memory_space<vmem>>, vector<1x1x54x16xf32>,
    return
  }
  func.func @transform_0(%arg0: i32) -> (i32, i32, i32) {
    %c0_i32 = arith.constant 0 : i32
    %c0_i32_0 = arith.constant 0 : i32
    %c0_i32_1 = arith.constant 0 : i32
    return %arg0, %c0_i32, %c0_i32_0 : i32, i32, i32
  }
  func.func @transform_1(%arg0: i32) -> (i32, i32) {
    %c0_i32 = arith.constant 0 : i32
    %c0_i32_0 = arith.constant 0 : i32
    %c0_i32_1 = arith.constant 0 : i32
    return %c0_i32, %c0_i32_0 : i32, i32
  }
  func.func @transform_2(%arg0: i32) -> (i32, i32) {
    %c0_i32 = arith.constant 0 : i32
    %c0_i32_0 = arith.constant 0 : i32
    %c0_i32_1 = arith.constant 0 : i32
    return %c0_i32, %c0_i32_0 : i32, i32
  }
  func.func @transform_3(%arg0: i32) -> (i32, i32) {
    %c0_i32 = arith.constant 0 : i32
    %c0_i32_0 = arith.constant 0 : i32
    %c0_i32_1 = arith.constant 0 : i32
    return %c0_i32, %c0_i32_0 : i32, i32
  }
  func.func @transform_4(%arg0: i32) -> (i32, i32) {
    %c0_i32 = arith.constant 0 : i32
    %c0_i32_0 = arith.constant 0 : i32
    %c0_i32_1 = arith.constant 0 : i32
    return %c0_i32, %c0_i32_0 : i32, i32
  }
  func.func @transform_5(%arg0: i32) -> (i32, i32, i32, i32) {
    %c0_i32 = arith.constant 0 : i32
    %c0_i32_0 = arith.constant 0 : i32
    %c0_i32_1 = arith.constant 0 : i32
    %c0_i32_2 = arith.constant 0 : i32
    return %arg0, %c0_i32, %c0_i32_0, %c0_i32_1 : i32, i32, i32, i32
  }
}

</mosaic_0001>

<bundles_post_ra>
// kernel: hog_features.1
= control target key start
LH: loop header
LB: loop body
LE: loop exit
PB: predicated region body
PF: predicated region fallthrough
CT: control target
= control target key end

     0   :  { %s2136_s18 = smov 0   ;;  %s3247_s0 = inlined_call_operand.vmem [shape: f32[2,32,128], index: 0, kind: input, shape index: {}]   ;;  %s3248_s1 = inlined_call_operand.vmem [shape: f32[128,16], index: 1, kind: input, shape index: {}]   ;;  %s3249_s2 = inlined_call_operand.vmem [shape: f32[36,288], index: 2, kind: input, shape index: {}]   ;;  %s3250_s3 = inlined_call_operand.vmem [shape: f32[54,36], index: 3, kind: input, shape index: {}]   ;;  %s3251_s4 = inlined_call_operand.vmem [shape: f32[54,36], index: 4, kind: input, shape index: {}]   ;;  %s3252_s5 = inlined_call_operand.vmem [shape: f32[2,3,54,16], index: 5, kind: output, shape index: {}]  }
   0x1 LB: > { %s1630_s19 = sadd.s32 4294967295, %s2098_s18   ;;  %p1634_p0 = scmp.ge.s32.totalorder %s2098_s18, 1  ;;  %s2098_s18 = sphi %s2136_s18, %s15_s18  }
   0x2   : > { %p187_p1 = scmp.lt.s32.totalorder %s2098_s18, 3 }
   0x4   : > { %p188_p2 = pnand %p1634_p0, %p187_p1 }
   0x5   : > { %p215_p3 = scmp.lt.s32.totalorder (!%p188_p2), %s1630_s19, 1  ;;  %s2100_s13 = smov (!%p188_p2), 127  }
   0x6   : > { %191 = sbr.rel (%p188_p2) target bundleno = 1085 (0x43d), region = 40  ;;  %s2101_s20 = smov (!%p188_p2), 1  }
   0x7   : > { %s2105_s27 = smov (!%p188_p2), 126  }
   0xb   : > { %v647_v0 = vld [vmem:[%s3248_s1 + $0x78] sm:$0xff]  ;;  %s3387_s19 = smov (!%p215_p3, %s1630_s19), 1  ;;  %v646_v5 = vld [vmem:[%s3248_s1 + $0x70] sm:$0xff]  ;;  %v645_v6 = vld [vmem:[%s3248_s1 + $0x68] sm:$0xff]  ;;  %vm261_vm8 = vcmask 1041408   ;;  %vm281_vm9 = vcmask 1046528   ;;  %v312_v58 = vlaneseq }
   0xc   : > { %1844 = vmatprep.subr.mxu0 %v647_v0  ;;  %s1711_s22 = sshll.u32 %s3387_s19, 5  ;;  %v644_v7 = vld [vmem:[%s3248_s1 + $0x60] sm:$0xff]  ;;  %v643_v8 = vld [vmem:[%s3248_s1 + $0x58] sm:$0xff]  ;;  %v642_v14 = vld [vmem:[%s3248_s1 + $0x50] sm:$0xff]  ;;  %vm293_vm12 = vcmask 1040384  }
   0xd   : > { %1845 = vmatpush3.msra.mxu0 %v647_v0  ;;  %s219_s25 = scalar_lea.vmem %s3247_s0, %s1711_s22  ;;  %v641_v22 = vld [vmem:[%s3248_s1 + $0x48] sm:$0xff]  ;;  %v640_v29 = vld [vmem:[%s3248_s1 + $0x40] sm:$0xff]  ;;  %v639_v35 = vld [vmem:[%s3248_s1 + $0x38] sm:$0xff]  ;;  %v313_v59 = vand.u32 127, %v312_v58 }
   0xe   : > { %v226_v1 = vld [vmem:[%s219_s25 + $0x8] sm:$0xff]  ;;  %v225_v2 = vld [vmem:[%s219_s25] sm:$0xff]  ;;  %v227_v3 = vld [vmem:[%s219_s25 + $0x10] sm:$0xff]  ;;  %1846 = vmatprep.subr.mxu0 %v646_v5 }
   0xf   : > { %2062 = vrsqrt.f32 %v226_v1  ;;  %v228_v4 = vld [vmem:[%s219_s25 + $0x18] sm:$0xff]  ;;  %1847 = vmatpush3.msra.mxu0 %v646_v5  ;;  %vm238_vm0 = vcmp.eq.f32.partialorder %v226_v1, inf  ;;  %vm240_vm1 = vcmp.eq.f32.partialorder %v226_v1, 0.0  ;;  %v241_v10 = vand.u32 2147483648, %v226_v1  ;;  %v638_v41 = vld [vmem:[%s3248_s1 + $0x30] sm:$0xff]  ;;  %v637_v47 = vld [vmem:[%s3248_s1 + $0x28] sm:$0xff] }
  0x10   : > { %2064 = vrsqrt.f32 %v225_v2  ;;  %1848 = vmatprep.subr.mxu0 %v645_v6  ;;  %vm231_vm2 = vcmp.eq.f32.partialorder %v225_v2, inf  ;;  %vm233_vm3 = vcmp.eq.f32.partialorder %v225_v2, 0.0  ;;  %v234_v13 = vand.u32 2147483648, %v225_v2  ;;  %v636_v51 = vld [vmem:[%s3248_s1 + $0x20] sm:$0xff]  ;;  %v635_v53 = vld [vmem:[%s3248_s1 + $0x18] sm:$0xff]  ;;  %v634_v55 = vld [vmem:[%s3248_s1 + $0x10] sm:$0xff] }
  0x11   : > { %2066 = vrsqrt.f32 %v227_v3  ;;  %1849 = vmatpush3.msra.mxu0 %v645_v6  ;;  %vm245_vm4 = vcmp.eq.f32.partialorder %v227_v3, inf  ;;  %vm247_vm5 = vcmp.eq.f32.partialorder %v227_v3, 0.0  ;;  %v248_v17 = vand.u32 2147483648, %v227_v3  ;;  %v633_v56 = vld [vmem:[%s3248_s1 + $0x8] sm:$0xff]  ;;  %v632_v57 = vld [vmem:[%s3248_s1] sm:$0xff] }
  0x12   : > { %2068 = vrsqrt.f32 %v228_v4  ;;  %1850 = vmatprep.subr.mxu0 %v644_v7  ;;  %vm252_vm6 = vcmp.eq.f32.partialorder %v228_v4, inf  ;;  %v255_v21 = vand.u32 2147483648, %v228_v4  ;;  %vm254_vm7 = vcmp.eq.f32.partialorder %v228_v4, 0.0 }
  0x13   : > { %1851 = vmatpush3.msra.mxu0 %v644_v7  ;;  %v318_v60 = vand.u32 31, %v313_v59 }
  0x14   : > { %1852 = vmatprep.subr.mxu0 %v643_v8 }
  0x15   : > { %1853 = vmatpush3.msra.mxu0 %v643_v8  ;;  %vm321_vm10 = vcmp.eq.s32.totalorder %v318_v60, 0  ;;  %vm322_vm11 = vcmp.eq.s32.totalorder %v318_v60, 31 }
  0x16   : > { %1854 = vmatprep.subr.mxu0 %v642_v14  ;;  %vm2220_vm13 = vmor %vm321_vm10, %vm322_vm11  ;;  %vm3257_vm11 = vmmov 1  }
  0x17   : > { %1855 = vmatpush3.msra.mxu0 %v642_v14 }
  0x18   : > { %1856 = vmatprep.subr.mxu0 %v641_v22 }
  0x19   : > { %1857 = vmatpush3.msra.mxu0 %v641_v22 }
  0x1a   : > { %1858 = vmatprep.subr.mxu0 %v640_v29 }
  0x1b   : > { %1859 = vmatpush3.msra.mxu0 %v640_v29 }
  0x1c   : > { %v2063_v9 = vpop.eup %2062  ;;  %1860 = vmatprep.subr.mxu0 %v639_v35 }
  0x1d   : > { %v2065_v11 = vpop.eup %2064  ;;  %v237_v12 = vmul.f32 %v2063_v9, %v226_v1  ;;  %1861 = vmatpush3.msra.mxu0 %v639_v35 }
  0x1e   : > { %v2067_v15 = vpop.eup %2066  ;;  %v230_v16 = vmul.f32 %v2065_v11, %v225_v2  ;;  %1862 = vmatprep.subr.mxu0 %v638_v41 }
  0x1f   : > { %v2069_v18 = vpop.eup %2068  ;;  %v239_v19 = vsel %vm238_vm0, %v226_v1, %v237_v12  ;;  %v244_v20 = vmul.f32 %v2067_v15, %v227_v3  ;;  %1863 = vmatpush3.msra.mxu0 %v638_v41 }
  0x20   : > { %v242_v23 = vsel %vm240_vm1, %v241_v10, %v239_v19  ;;  %v232_v24 = vsel %vm231_vm2, %v225_v2, %v230_v16  ;;  %v251_v25 = vmul.f32 %v2069_v18, %v228_v4  ;;  %1864 = vmatprep.subr.mxu0 %v637_v47 }
  0x21   : > { %298 = vrot.lane.b32.xlu1 %v242_v23, %s2100_s13  ;;  %v263_v26 = vrot.slane %v242_v23, 6  ;;  %v235_v27 = vsel %vm233_vm3, %v234_v13, %v232_v24  ;;  %v246_v28 = vsel %vm245_vm4, %v227_v3, %v244_v20  ;;  %1865 = vmatpush3.msra.mxu0 %v637_v47 }
  0x22   : > { %296 = vrot.lane.b32.xlu0 %v235_v27, %s2100_s13  ;;  %v262_v30 = vrot.slane %v235_v27, 6  ;;  %v249_v31 = vsel %vm247_vm5, %v248_v17, %v246_v28  ;;  %v253_v32 = vsel %vm252_vm6, %v228_v4, %v251_v25  ;;  %1866 = vmatprep.subr.mxu0 %v636_v51 }
  0x23   : > { %v265_v33 = vrot.slane %v249_v31, 6  ;;  %v256_v34 = vsel %vm254_vm7, %v255_v21, %v253_v32  ;;  %1867 = vmatpush3.msra.mxu0 %v636_v51 }
  0x24   : > { %v264_v36 = vsel %vm261_vm8, %v262_v30, %v263_v26  ;;  %v273_v37 = vsub.f32 %v235_v27, %v262_v30  ;;  %v267_v38 = vrot.slane %v256_v34, 6  ;;  %1868 = vmatprep.subr.mxu0 %v635_v53 }
  0x25   : > { %v274_v39 = vsub.f32 %v242_v23, %v264_v36  ;;  %306 = vrot.lane.b32.xlu1 %v242_v23, %s2101_s20  ;;  %v266_v40 = vsel %vm261_vm8, %v263_v26, %v265_v33  ;;  %1869 = vmatpush3.msra.mxu0 %v635_v53 }
  0x26   : > { %v282_v42 = vrot.slane %v273_v37, 1  ;;  %304 = vrot.lane.b32.xlu0 %v235_v27, %s2101_s20  ;;  %v275_v43 = vsub.f32 %v249_v31, %v266_v40  ;;  %v268_v44 = vsel %vm261_vm8, %v265_v33, %v267_v38  ;;  %1870 = vmatprep.subr.mxu0 %v634_v55 }
  0x27   : > { %v283_v45 = vrot.slane %v274_v39, 1  ;;  %v276_v46 = vsub.f32 %v256_v34, %v268_v44  ;;  %1871 = vmatpush3.msra.mxu0 %v634_v55 }
  0x28   : > { %v285_v48 = vrot.slane %v275_v43, 1  ;;  %1872 = vmatprep.subr.mxu0 %v633_v56 }
  0x29   : > { %308 = vrot.lane.b32.xlu1 %v249_v31, %s2101_s20  ;;  %v287_v49 = vrot.slane %v276_v46, 1  ;;  %v284_v50 = vsel %vm281_vm9, %v282_v42, %v283_v45  ;;  %1873 = vmatpush3.msra.mxu0 %v633_v56 }
  0x2a   : > { %300 = vrot.lane.b32.xlu0 %v249_v31, %s2100_s13  ;;  %v2202_v52 = vsel %vm281_vm9, %v283_v45, %v285_v48  ;;  %1874 = vmatprep.subr.mxu0 %v632_v57  ;;  %v2224_v1 = vsel %vm293_vm12, 0.0, %v284_v50 }
  0x2b   : > { %v2208_v54 = vsel %vm281_vm9, %v285_v48, %v287_v49  ;;  %1875 = vmatpush3.msra.mxu0 %v632_v57  ;;  %v333_v4 = vmul.f32 %v2202_v52, %v2202_v52  ;;  %v332_v7 = vmul.f32 %v2224_v1, %v2224_v1  ;;  %vm372_vm14 = vcmp.lt.f32.partialorder %v2224_v1, 0.0 }
  0x2c   : > { %v2236_v14 = vsel %vm281_vm9, %v287_v49, 0.0  ;;  %v2241_v16 = vand.u32 2147483647, %v2224_v1  ;;  %vm373_vm15 = vcmp.lt.f32.partialorder %v2202_v52, 0.0  ;;  %v334_v19 = vmul.f32 %v2208_v54, %v2208_v54 }
  0x2d   : > { %310 = vrot.lane.b32.xlu1 %v256_v34, %s2101_s20  ;;  %v2254_v24 = vand.u32 2147483647, %v2236_v14  ;;  %v2257_v25 = vand.u32 2147483647, %v2202_v52  ;;  %v2261_v28 = vand.u32 2147483647, %v2208_v54  ;;  %v335_v37 = vmul.f32 %v2236_v14, %v2236_v14 }
  0x2e   : > { %302 = vrot.lane.b32.xlu0 %v256_v34, %s2100_s13  ;;  %v392_v30 = vmul.f32 0.9396926, %v2241_v16  ;;  %v412_v31 = vmul.f32 0.76604444, %v2241_v16  ;;  %vm374_vm0 = vcmp.lt.f32.partialorder %v2208_v54, 0.0  ;;  %vm375_vm1 = vcmp.lt.f32.partialorder %v2236_v14, 0.0 }
  0x2f   : > { %v393_v39 = vmul.f32 0.9396926, %v2257_v25  ;;  %vm3253_vm2 = vcmp.ne.f32.partialorder %v2224_v1, 0.0  ;;  %v394_v46 = vmul.f32 0.9396926, %v2261_v28  ;;  %vm3254_vm6 = vcmp.ne.f32.partialorder %v2202_v52, 0.0 }
  0x30   : > { %v395_v49 = vmul.f32 0.9396926, %v2254_v24  ;;  %v413_v53 = vmul.f32 0.76604444, %v2257_v25  ;;  %vm3256_vm8 = vcmp.ne.f32.partialorder %v2236_v14, 0.0  ;;  %vm3255_vm10 = vcmp.ne.f32.partialorder %v2208_v54, 0.0 }
  0x31   : > { %v452_v55 = vmul.f32 0.17364818, %v2241_v16  ;;  %v455_v60 = vmul.f32 0.17364818, %v2254_v24 }
  0x93   : > { %v299_v61 = vpop.permute.xlu1 %298 }
  0x94   : > { %v297_v62 = vpop.permute.xlu0 %296 }
  0x97   : > { %v307_v0 = vpop.permute.xlu1 %306 }
  0x98   : > { %v325_v2 = vsub.f32 %v299_v61, %v307_v0  ;;  %v305_v3 = vpop.permute.xlu0 %304 }
  0x99   : > { %v324_v5 = vsub.f32 %v297_v62, %v305_v3  ;;  %v414_v62 = vmul.f32 0.76604444, %v2261_v28 }
  0x9a   : > { %v329_v6 = vsel %vm2220_vm13, 0.0, %v325_v2 }
  0x9b   : > { %v337_v8 = vmul.f32 %v329_v6, %v329_v6  ;;  %v328_v9 = vsel %vm2220_vm13, 0.0, %v324_v5  ;;  %v309_v10 = vpop.permute.xlu1 %308  ;;  %v381_v20 = vsub.f32 0.0, %v329_v6 }
  0x9c   : > { %v336_v11 = vmul.f32 %v328_v9, %v328_v9  ;;  %v380_v12 = vsub.f32 0.0, %v328_v9  ;;  %v301_v13 = vpop.permute.xlu0 %300 }
  0x9d   : > { %v2238_v15 = vadd.f32 %v337_v8, %v333_v4  ;;  %v326_v17 = vsub.f32 %v301_v13, %v309_v10  ;;  %v2275_v36 = vsel %vm373_vm15, %v381_v20, %v329_v6  ;;  %v415_v4 = vmul.f32 0.76604444, %v2254_v24 }
  0x9e   : > { %v2244_v18 = vadd.f32 %v336_v11, %v332_v7  ;;  %v2249_v21 = vsel %vm372_vm14, %v380_v12, %v328_v9  ;;  %v2291_v45 = vmul.f32 0.34202015, %v2275_v36  ;;  %v2300_v50 = vmul.f32 0.64278764, %v2275_v36  ;;  %v901_v7 = vld [vmem:[%s3249_s2 + $0x40] sm:$0xff] }
  0x9f   : > { %2070 = vrsqrt.f32 %v2238_v15  ;;  %v330_v22 = vsel %vm2220_vm13, 0.0, %v326_v17  ;;  %v311_v23 = vpop.permute.xlu1 %310  ;;  %v2268_v34 = vmul.f32 0.34202015, %v2249_v21  ;;  %v2271_v35 = vmul.f32 0.64278764, %v2249_v21 }
  0xa0   : > { %2072 = vrsqrt.f32 %v2244_v18  ;;  %v338_v26 = vmul.f32 %v330_v22, %v330_v22  ;;  %v303_v27 = vpop.permute.xlu0 %302  ;;  %v382_v33 = vsub.f32 0.0, %v330_v22  ;;  %v401_v51 = vsub.f32 %v393_v39, %v2291_v45 }
  0xa1   : > { %v327_v29 = vsub.f32 %v303_v27, %v311_v23  ;;  %v400_v42 = vsub.f32 %v392_v30, %v2268_v34  ;;  %v420_v43 = vsub.f32 %v412_v31, %v2271_v35  ;;  %v421_v3 = vsub.f32 %v413_v53, %v2300_v50 }
  0xa2   : > { %v2265_v32 = vadd.f32 %v338_v26, %v334_v19  ;;  %v2288_v44 = vsel %vm374_vm0, %v382_v33, %v330_v22  ;;  %vm2315_vm7 = vcmp.ge.f32.partialorder %v401_v51, 0.0  ;;  %vm353_vm14 = vcmp.eq.f32.partialorder %v2238_v15, inf }
  0xa3   : > { %v331_v38 = vsel %vm2220_vm13, 0.0, %v327_v29  ;;  %vm404_vm3 = vcmp.ge.f32.partialorder %v400_v42, 0.0  ;;  %vm424_vm4 = vcmp.ge.f32.partialorder %v420_v43, 0.0  ;;  %v2312_v56 = vmul.f32 0.34202015, %v2288_v44  ;;  %vm2352_vm15 = vmand %vm2315_vm7, %vm3254_vm6 }
  0xa4   : > { %2074 = vrsqrt.f32 %v2265_v32  ;;  %v339_v40 = vmul.f32 %v331_v38, %v331_v38  ;;  %v383_v41 = vsub.f32 0.0, %v331_v38  ;;  %vm2307_vm5 = vmand %vm404_vm3, %vm3253_vm2  ;;  %v2324_v59 = vmul.f32 0.64278764, %v2288_v44 }
  0xa5   : > { %vm2328_vm9 = vmand %vm424_vm4, %vm3253_vm2  ;;  %v402_v61 = vsub.f32 %v394_v46, %v2312_v56  ;;  %vm346_vm13 = vcmp.eq.f32.partialorder %v2244_v18, inf  ;;  %v349_v10 = vand.u32 2147483648, %v2244_v18  ;;  %v356_v12 = vand.u32 2147483648, %v2238_v15 }
  0xa6   : > { %v2294_v47 = vadd.f32 %v339_v40, %v335_v37  ;;  %v2296_v48 = vsel %vm375_vm1, %v383_v41, %v331_v38  ;;  %vm2338_vm12 = vmxor %vm2307_vm5, %vm3257_vm11  ;;  %vm355_vm3 = vcmp.eq.f32.partialorder %v2238_v15, 0.0  ;;  %v422_v19 = vsub.f32 %v414_v62, %v2324_v59 }
  0xa7   : > { %v2320_v58 = vmul.f32 0.34202015, %v2296_v48  ;;  %vm406_vm0 = vcmp.ge.f32.partialorder %v402_v61, 0.0  ;;  %v2358_v9 = vmul.f32 0.64278764, %v2296_v48  ;;  %vm2364_vm1 = vmxor %vm2328_vm9, %vm3257_vm11  ;;  %vm348_vm2 = vcmp.eq.f32.partialorder %v2244_v18, 0.0 }
  0xa8   : > { %2076 = vrsqrt.f32 %v2294_v47  ;;  %vm2373_vm4 = vmand %vm406_vm0, %vm3255_vm10  ;;  %vm425_vm6 = vcmp.ge.f32.partialorder %v421_v3, 0.0  ;;  %v2386_v23 = vmul.f32 0.8660254, %v2249_v21  ;;  %v363_v33 = vand.u32 2147483648, %v2265_v32 }
  0xa9   : > { %v403_v2 = vsub.f32 %v395_v49, %v2320_v58  ;;  %vm2393_vm0 = vmxor %vm2373_vm4, %vm3257_vm11  ;;  %v423_v31 = vsub.f32 %v415_v4, %v2358_v9  ;;  %v3287_v37 = vmov 0  ;;  %v433_v38 = vmul.f32 0.5, %v2257_v25 }
  0xaa   : > { %v2424_v39 = vmul.f32 0.8660254, %v2275_v36  ;;  %v2436_v42 = vmul.f32 -0.9396926, %v2241_v16  ;;  %v3294_v51 = vmov 0  ;;  %v3296_v61 = vmov 0 }
  0xab   : > { %vm407_vm7 = vcmp.ge.f32.partialorder %v403_v2, 0.0  ;;  %v2462_v53 = vmul.f32 0.8660254, %v2288_v44  ;;  %v434_v62 = vmul.f32 0.5, %v2261_v28  ;;  %v3320_v17 = vmov 0 }
  0xac   : > { %v2071_v63 = vpop.eup %2070  ;;  %v441_v0 = vsub.f32 %v433_v38, %v2424_v39  ;;  %v524_v2 = vsub.f32 %v2436_v42, %v2268_v34  ;;  %v458_v27 = vmul.f32 0.9848077, %v2288_v44  ;;  %v459_v30 = vmul.f32 0.9848077, %v2296_v48 }
  0xad   : > { %v2073_v5 = vpop.eup %2072  ;;  %v352_v6 = vmul.f32 %v2071_v63, %v2238_v15  ;;  %v370_v63 = vand.u32 2147483648, %v2294_v47  ;;  %v489_v4 = vmul.f32 -0.5, %v2257_v25 }
  0xae   : > { %v345_v8 = vmul.f32 %v2073_v5, %v2244_v18  ;;  %v2491_v5 = vmul.f32 0.8660254, %v2296_v48 }
  0xaf   : > { %v354_v13 = vsel %vm353_vm14, %v2238_v15, %v352_v6  ;;  %vm537_vm14 = vmxor %vm2352_vm15, %vm3257_vm11 }
  0xb0   : > { %v347_v20 = vsel %vm346_vm13, %v2244_v18, %v345_v8  ;;  %v2380_v22 = vsel %vm355_vm3, %v356_v12, %v354_v13  ;;  %v432_v18 = vmul.f32 0.5, %v2241_v16  ;;  %vm2404_vm13 = vmand %vm407_vm7, %vm3256_vm8  ;;  %vm360_vm3 = vcmp.eq.f32.partialorder %v2265_v32, inf }
  0xb1   : > { %v2075_v15 = vpop.eup %2074  ;;  %v2388_v26 = vsel %vm348_vm2, %v349_v10, %v347_v20  ;;  %vm426_vm7 = vcmp.ge.f32.partialorder %v422_v19, 0.0  ;;  %vm427_vm8 = vcmp.ge.f32.partialorder %v423_v31, 0.0  ;;  %v442_v10 = vsub.f32 %v434_v62, %v2462_v53 }
  0xb2   : > { %v359_v29 = vmul.f32 %v2075_v15, %v2265_v32  ;;  %1876 = vmatprep.mubr.msk.f32.mxu0 %vm2338_vm12, %v2388_v26  ;;  %vm3286_vm12 = vcmp.ne.f32.partialorder %v2202_v52, 0.0  ;;  %v3306_v12 = vmov 0  ;;  %v456_v13 = vmul.f32 0.9848077, %v2249_v21  ;;  %v895_v21 = vld [vmem:[%s3249_s2 + $0x10] sm:$0xff] }
  0xb3   : > { %1877 = vmatmul.mubr.msk.f32.vlgmr.msra.gmra.mxu0 %vm537_vm14, %v2380_v22  ;;  %vm2418_vm10 = vmand %vm425_vm6, %vm3286_vm12  ;;  %vm362_vm14 = vcmp.eq.f32.partialorder %v2265_v32, 0.0  ;;  %vm3293_vm12 = vcmp.ne.f32.partialorder %v2208_v54, 0.0  ;;  %v457_v20 = vmul.f32 0.9848077, %v2275_v36  ;;  %v453_v15 = vmul.f32 0.17364818, %v2257_v25 }
  0xb4   : > { %v3288_v37 = vsel %vm2418_vm10, 4294967295, %v3287_v37  ;;  %v361_v40 = vsel %vm360_vm3, %v2265_v32, %v359_v29  ;;  %vm2431_vm2 = vmxor %vm2418_vm10, %vm3257_vm11  ;;  %v440_v32 = vsub.f32 %v432_v18, %v2386_v23  ;;  %vm369_vm3 = vcmp.eq.f32.partialorder %v2294_v47, 0.0 }
  0xb5   : > { %v2438_v43 = vsel %vm362_vm14, %v363_v33, %v361_v40  ;;  %vm2443_vm6 = vmxor %vm2404_vm13, %vm3257_vm11  ;;  %v2077_v49 = vpop.eup %2076  ;;  %v460_v36 = vsub.f32 %v452_v55, %v456_v13  ;;  %v454_v18 = vmul.f32 0.17364818, %v2261_v28  ;;  %v461_v44 = vsub.f32 %v453_v15, %v457_v20 }
  0xb6   : > { %1879 = vmatprep.mubr.msk.f32.mxu0 %vm2393_vm0, %v2438_v43  ;;  %vm2457_vm14 = vmand %vm426_vm7, %vm3293_vm12  ;;  %v366_v57 = vmul.f32 %v2077_v49, %v2294_v47  ;;  %vm367_vm7 = vcmp.eq.f32.partialorder %v2294_v47, inf  ;;  %vm444_vm10 = vcmp.ge.f32.partialorder %v440_v32, 0.0  ;;  %vm3301_vm12 = vmmov 1  }
  0xb7   : > { %v3295_v51 = vsel %vm2457_vm14, 4294967295, %v3294_v51  ;;  %vm2468_vm0 = vmxor %vm2457_vm14, %vm3257_vm11  ;;  %vm3298_vm11 = vcmp.ne.f32.partialorder %v2236_v14, 0.0  ;;  %v462_v31 = vsub.f32 %v454_v18, %v458_v27  ;;  %v472_v33 = vmul.f32 -0.17364818, %v2241_v16 }
  0xb8   : > { %v3297_v61 = vsel %vm2468_vm0, 4294967295, %v3296_v61  ;;  %v368_v3 = vsel %vm367_vm7, %v2294_v47, %v366_v57  ;;  %vm2486_vm14 = vmand %vm427_vm8, %vm3298_vm11  ;;  %v435_v47 = vmul.f32 0.5, %v2254_v24  ;;  %v473_v40 = vmul.f32 -0.17364818, %v2257_v25 }
  0xb9   : > { %v2493_v6 = vsel %vm369_vm3, %v370_v63, %v368_v3  ;;  %vm2498_vm0 = vmxor %vm2486_vm14, %vm3301_vm12  ;;  %vm3305_vm3 = vcmp.ne.f32.partialorder %v2224_v1, 0.0  ;;  %v476_v41 = vsub.f32 %v472_v33, %v456_v13  ;;  %v474_v32 = vmul.f32 -0.17364818, %v2261_v28 }
  0xba   : > { %1880 = vmatmul.mubr.msk.f32.gmra.mxu0 %vm2443_vm6, %v2493_v6  ;;  %vm3304_vm11 = vmand %vm2307_vm5, %vm2364_vm1  ;;  %vm445_vm6 = vcmp.ge.f32.partialorder %v441_v0, 0.0  ;;  %v443_v11 = vsub.f32 %v435_v47, %v2491_v5  ;;  %vm3311_vm1 = vcmp.ne.f32.partialorder %v2202_v52, 0.0  ;;  %vm3314_vm5 = vnez %v3297_v61 }
  0xbb   : > { %1882 = vmatprep.mubr.msk.f32.mxu0 %vm3304_vm11, %v2388_v26  ;;  %vm2519_vm7 = vmand %vm444_vm10, %vm3305_vm3  ;;  %vm446_vm3 = vcmp.ge.f32.partialorder %v442_v10, 0.0  ;;  %v477_v49 = vsub.f32 %v473_v40, %v457_v20  ;;  %v475_v57 = vmul.f32 -0.17364818, %v2254_v24  ;;  %v478_v61 = vsub.f32 %v474_v32, %v458_v27 }
  0xbc   : > { %v3307_v12 = vsel %vm2519_vm7, 4294967295, %v3306_v12  ;;  %vm2527_vm8 = vmxor %vm2519_vm7, %vm3301_vm12  ;;  %v488_v63 = vmul.f32 -0.5, %v2241_v16  ;;  %v490_v10 = vmul.f32 -0.5, %v2261_v28  ;;  %v491_v13 = vmul.f32 -0.5, %v2254_v24 }
  0xbd   : > { %vm3310_vm10 = vmand %vm2352_vm15, %vm2431_vm2  ;;  %vm3318_vm2 = vnez %v3288_v37  ;;  %v463_v37 = vsub.f32 %v455_v60, %v459_v30  ;;  %v479_v0 = vsub.f32 %v475_v57, %v459_v30  ;;  %v504_v55 = vmul.f32 -0.76604444, %v2241_v16 }
  0xbe   : > { %1883 = vmatmul.mubr.msk.f32.gmra.mxu0 %vm3310_vm10, %v2380_v22  ;;  %vm2545_vm11 = vmand %vm445_vm6, %vm3311_vm1  ;;  %vm3319_vm10 = vcmp.ne.f32.partialorder %v2208_v54, 0.0  ;;  %v492_v8 = vsub.f32 %v488_v63, %v2386_v23  ;;  %v493_v23 = vsub.f32 %v489_v4, %v2424_v39  ;;  %v494_v39 = vsub.f32 %v490_v10, %v2462_v53 }
  0xbf   : > { %vm3315_vm7 = vmand %vm2373_vm4, %vm3314_vm5  ;;  %vm447_vm4 = vcmp.ge.f32.partialorder %v443_v11, 0.0  ;;  %v495_v53 = vsub.f32 %v491_v13, %v2491_v5  ;;  %v505_v16 = vmul.f32 -0.76604444, %v2257_v25  ;;  %v508_v5 = vsub.f32 %v504_v55, %v2271_v35  ;;  %v906_v13 = vld [vmem:[%s3249_s2 + $0x68] sm:$0xf]  ;;  %v897_v55 = vld [vmem:[%s3249_s2 + $0x20] sm:$0xff] }
  0xc0   : > { %1885 = vmatprep.mubr.msk.f32.mxu0 %vm3315_vm7, %v2438_v43  ;;  %vm2559_vm15 = vmxor %vm2545_vm11, %vm3301_vm12  ;;  %v506_v20 = vmul.f32 -0.76604444, %v2261_v28  ;;  %v507_v15 = vmul.f32 -0.76604444, %v2254_v24  ;;  %v521_v27 = vmul.f32 -0.9396926, %v2257_v25 }
  0xc1   : > { %vm2570_vm1 = vmand %vm446_vm3, %vm3319_vm10  ;;  %vm3324_vm10 = vnez %v3295_v51  ;;  %v509_v35 = vsub.f32 %v505_v16, %v2300_v50  ;;  %v522_v18 = vmul.f32 -0.9396926, %v2261_v28  ;;  %v523_v28 = vmul.f32 -0.9396926, %v2254_v24  ;;  %v896_v16 = vld [vmem:[%s3249_s2 + $0x18] sm:$0xff] }
  0xc2   : > { %v3321_v17 = vsel %vm2570_vm1, 4294967295, %v3320_v17  ;;  %vm3322_vm7 = vmand %vm2404_vm13, %vm2498_vm0  ;;  %vm3325_vm13 = vcmp.ne.f32.partialorder %v2236_v14, 0.0  ;;  %v510_v50 = vsub.f32 %v506_v20, %v2324_v59  ;;  %v525_v25 = vsub.f32 %v521_v27, %v2291_v45  ;;  %v899_v20 = vld [vmem:[%s3249_s2 + $0x30] sm:$0xff] }
  0xc3   : > { %1886 = vmatmul.mubr.msk.f32.gmra.mxu0 %vm3322_vm7, %v2493_v6  ;;  %vm550_vm5 = vmxor %vm2570_vm1, %vm3301_vm12  ;;  %vm464_vm7 = vcmp.ge.f32.partialorder %v460_v36, 0.0  ;;  %v526_v45 = vsub.f32 %v522_v18, %v2312_v56  ;;  %v3380_v29 = vmov 0  ;;  %v527_v24 = vsub.f32 %v523_v28, %v2320_v58 }
  0xc4   : > { %vm3323_vm3 = vmand %vm2328_vm9, %vm2527_vm8  ;;  %v2103_v19 = vmov 0.0  }
  0xc5   : > { %1888 = vmatprep.mubr.msk.f32.mxu0 %vm3323_vm3, %v2388_v26  ;;  %vm554_vm6 = vmand %vm3324_vm10, %vm550_vm5  ;;  %vm465_vm3 = vcmp.ge.f32.partialorder %v461_v44, 0.0 }
  0xc6   : > { %vm2595_vm0 = vmand %vm447_vm4, %vm3325_vm13  ;;  %vm3329_vm4 = vcmp.ne.f32.partialorder %v2224_v1, 0.0 }
  0xc7   : > { %vm551_vm1 = vmxor %vm2595_vm0, %vm3301_vm12 }
  0xc8   : > { %vm3328_vm9 = vmand %vm3318_vm2, %vm2559_vm15  ;;  %vm3332_vm15 = vnez %v3307_v12 }
  0xc9   : > { %1889 = vmatmul.mubr.msk.f32.gmra.mxu0 %vm3328_vm9, %v2380_v22  ;;  %vm555_vm8 = vmand %vm2486_vm14, %vm551_vm1  ;;  %vm3333_vm14 = vcmp.ne.f32.partialorder %v2202_v52, 0.0  ;;  %vm466_vm1 = vcmp.ge.f32.partialorder %v462_v31, 0.0  ;;  %vm3336_vm9 = vcmp.ne.f32.partialorder %v2208_v54, 0.0 }
  0xca   : > { %1891 = vmatprep.mubr.msk.f32.mxu0 %vm554_vm6, %v2438_v43  ;;  %vm2615_vm5 = vmand %vm464_vm7, %vm3329_vm4  ;;  %vm467_vm4 = vcmp.ge.f32.partialorder %v463_v37, 0.0 }
  0xcb   : > { %vm556_vm10 = vmxor %vm2615_vm5, %vm3301_vm12 }
  0xcc   : > { %vm560_vm2 = vmand %vm3332_vm15, %vm556_vm10  ;;  %vm3339_vm10 = vnez %v3321_v17  ;;  %v511_v17 = vsub.f32 %v507_v15, %v2358_v9  ;;  %v904_v15 = vld [vmem:[%s3249_s2 + $0x58] sm:$0xff] }
  0xcd   : > { %1892 = vmatmul.mubr.msk.f32.gmra.mxu0 %vm555_vm8, %v2493_v6  ;;  %vm2628_vm6 = vmand %vm465_vm3, %vm3333_vm14  ;;  %vm480_vm14 = vcmp.ge.f32.partialorder %v476_v41, 0.0 }
  0xce   : > { %1894 = vmatprep.mubr.msk.f32.mxu0 %vm560_vm2, %v2388_v26  ;;  %vm557_vm13 = vmxor %vm2628_vm6, %vm3301_vm12 }
  0xcf   : > { %vm561_vm7 = vmand %vm2545_vm11, %vm557_vm13  ;;  %vm3340_vm11 = vcmp.ne.f32.partialorder %v2236_v14, 0.0 }
  0xd0   : > { %vm2641_vm8 = vmand %vm466_vm1, %vm3336_vm9 }
  0xd1   : > { %1895 = vmatmul.mubr.msk.f32.gmra.mxu0 %vm561_vm7, %v2380_v22  ;;  %vm558_vm3 = vmxor %vm2641_vm8, %vm3301_vm12  ;;  %vm3343_vm7 = vcmp.ne.f32.partialorder %v2224_v1, 0.0 }
  0xd2   : > { %vm562_vm15 = vmand %vm3339_vm10, %vm558_vm3 }
  0xd3   : > { %1897 = vmatprep.mubr.msk.f32.mxu0 %vm562_vm15, %v2438_v43  ;;  %vm2655_vm2 = vmand %vm467_vm4, %vm3340_vm11  ;;  %vm481_vm4 = vcmp.ge.f32.partialorder %v477_v49, 0.0  ;;  %vm482_vm11 = vcmp.ge.f32.partialorder %v478_v61, 0.0 }
  0xd4   : > { %vm559_vm1 = vmxor %vm2655_vm2, %vm3301_vm12 }
  0xd5   : > { %vm563_vm13 = vmand %vm2595_vm0, %vm559_vm1  ;;  %vm3346_vm0 = vcmp.ne.f32.partialorder %v2202_v52, 0.0 }
  0xd6   : > { %1898 = vmatmul.mubr.msk.f32.gmra.mxu0 %vm563_vm13, %v2493_v6  ;;  %vm2668_vm9 = vmand %vm480_vm14, %vm3343_vm7  ;;  %vm483_vm7 = vcmp.ge.f32.partialorder %v479_v0, 0.0 }
  0xd7   : > { %vm564_vm3 = vmxor %vm2668_vm9, %vm3301_vm12 }
  0xd8   : > { %vm568_vm10 = vmand %vm2615_vm5, %vm564_vm3  ;;  %vm3349_vm5 = vcmp.ne.f32.partialorder %v2208_v54, 0.0  ;;  %vm3352_vm3 = vcmp.ne.f32.partialorder %v2236_v14, 0.0 }
  0xd9   : > { %1900 = vmatprep.mubr.msk.f32.mxu0 %vm568_vm10, %v2388_v26  ;;  %vm2681_vm15 = vmand %vm481_vm4, %vm3346_vm0  ;;  %vm496_vm0 = vcmp.ge.f32.partialorder %v492_v8, 0.0 }
  0xda   : > { %vm565_vm14 = vmxor %vm2681_vm15, %vm3301_vm12 }
  0xdb   : > { %vm569_vm1 = vmand %vm2628_vm6, %vm565_vm14  ;;  %vm3355_vm14 = vcmp.ne.f32.partialorder %v2224_v1, 0.0 }
  0xdc   : > { %1901 = vmatmul.mubr.msk.f32.gmra.mxu0 %vm569_vm1, %v2380_v22  ;;  %vm2695_vm13 = vmand %vm482_vm11, %vm3349_vm5  ;;  %vm497_vm5 = vcmp.ge.f32.partialorder %v493_v23, 0.0  ;;  %v902_v23 = vld [vmem:[%s3249_s2 + $0x48] sm:$0xff] }
  0xdd   : > { %vm566_vm4 = vmxor %vm2695_vm13, %vm3301_vm12 }
  0xde   : > { %vm570_vm6 = vmand %vm2641_vm8, %vm566_vm4  ;;  %vm3358_vm4 = vcmp.ne.f32.partialorder %v2202_v52, 0.0 }
  0xdf   : > { %1903 = vmatprep.mubr.msk.f32.mxu0 %vm570_vm6, %v2438_v43  ;;  %vm2709_vm10 = vmand %vm483_vm7, %vm3352_vm3  ;;  %vm498_vm3 = vcmp.ge.f32.partialorder %v494_v39, 0.0  ;;  %v893_v39 = vld [vmem:[%s3249_s2] sm:$0xff] }
  0xe0   : > { %vm567_vm11 = vmxor %vm2709_vm10, %vm3301_vm12 }
  0xe1   : > { %vm571_vm8 = vmand %vm2655_vm2, %vm567_vm11  ;;  %vm3361_vm11 = vcmp.ne.f32.partialorder %v2208_v54, 0.0 }
  0xe2   : > { %1904 = vmatmul.mubr.msk.f32.gmra.mxu0 %vm571_vm8, %v2493_v6  ;;  %vm2723_vm1 = vmand %vm496_vm0, %vm3355_vm14  ;;  %vm499_vm14 = vcmp.ge.f32.partialorder %v495_v53, 0.0  ;;  %v905_v53 = vld [vmem:[%s3249_s2 + $0x60] sm:$0xf] }
  0xe3   : > { %vm572_vm7 = vmxor %vm2723_vm1, %vm3301_vm12 }
  0xe4   : > { %vm576_vm2 = vmand %vm2668_vm9, %vm572_vm7  ;;  %vm3364_vm7 = vcmp.ne.f32.partialorder %v2236_v14, 0.0 }
  0xe5   : > { %1906 = vmatprep.mubr.msk.f32.mxu0 %vm576_vm2, %v2388_v26  ;;  %vm2737_vm6 = vmand %vm497_vm5, %vm3358_vm4  ;;  %vm512_vm4 = vcmp.ge.f32.partialorder %v508_v5, 0.0  ;;  %v900_v5 = vld [vmem:[%s3249_s2 + $0x38] sm:$0xff] }
  0xe6   : > { %vm573_vm0 = vmxor %vm2737_vm6, %vm3301_vm12 }
  0xe7   : > { %vm577_vm9 = vmand %vm2681_vm15, %vm573_vm0  ;;  %vm3367_vm0 = vcmp.ne.f32.partialorder %v2224_v1, 0.0 }
  0xe8   : > { %1907 = vmatmul.mubr.msk.f32.gmra.mxu0 %vm577_vm9, %v2380_v22  ;;  %vm2751_vm8 = vmand %vm498_vm3, %vm3361_vm11  ;;  %vm513_vm11 = vcmp.ge.f32.partialorder %v509_v35, 0.0  ;;  %v898_v35 = vld [vmem:[%s3249_s2 + $0x28] sm:$0xff] }
  0xe9   : > { %vm574_vm5 = vmxor %vm2751_vm8, %vm3301_vm12 }
  0xea   : > { %vm578_vm15 = vmand %vm2695_vm13, %vm574_vm5 }
  0xeb   : > { %1909 = vmatprep.mubr.msk.f32.mxu0 %vm578_vm15, %v2438_v43  ;;  %vm2765_vm2 = vmand %vm499_vm14, %vm3364_vm7  ;;  %vm514_vm7 = vcmp.ge.f32.partialorder %v510_v50, 0.0  ;;  %v907_v50 = vld [vmem:[%s3249_s2 + $0x70] sm:$0xf] }
  0xec   : > { %vm575_vm3 = vmxor %vm2765_vm2, %vm3301_vm12 }
  0xed   : > { %vm579_vm13 = vmand %vm2709_vm10, %vm575_vm3  ;;  %vm3370_vm10 = vcmp.ne.f32.partialorder %v2202_v52, 0.0  ;;  %vm3373_vm3 = vcmp.ne.f32.partialorder %v2208_v54, 0.0 }
  0xee   : > { %1910 = vmatmul.mubr.msk.f32.gmra.mxu0 %vm579_vm13, %v2493_v6  ;;  %vm2779_vm9 = vmand %vm512_vm4, %vm3367_vm0  ;;  %vm515_vm0 = vcmp.ge.f32.partialorder %v511_v17, 0.0 }
  0xef   : > { %vm580_vm14 = vmxor %vm2779_vm9, %vm3301_vm12 }
  0xf0   : > { %vm584_vm5 = vmand %vm2723_vm1, %vm580_vm14 }
  0xf1   : > { %1912 = vmatprep.mubr.msk.f32.mxu0 %vm584_vm5, %v2388_v26  ;;  %vm2792_vm15 = vmand %vm513_vm11, %vm3370_vm10  ;;  %vm528_vm10 = vcmp.ge.f32.partialorder %v524_v2, 0.0 }
  0xf2   : > { %vm581_vm4 = vmxor %vm2792_vm15, %vm3301_vm12 }
  0xf3   : > { %vm585_vm1 = vmand %vm2737_vm6, %vm581_vm4  ;;  %vm3376_vm6 = vcmp.ne.f32.partialorder %v2236_v14, 0.0  ;;  %vm3379_vm4 = vcmp.ne.f32.partialorder %v2224_v1, 0.0 }
  0xf4   : > { %1913 = vmatmul.mubr.msk.f32.gmra.mxu0 %vm585_vm1, %v2380_v22  ;;  %vm2805_vm13 = vmand %vm514_vm7, %vm3373_vm3  ;;  %vm529_vm3 = vcmp.ge.f32.partialorder %v525_v25, 0.0 }
  0xf5   : > { %vm582_vm11 = vmxor %vm2805_vm13, %vm3301_vm12 }
  0xf6   : > { %vm586_vm14 = vmand %vm2751_vm8, %vm582_vm11 }
  0xf7   : > { %1915 = vmatprep.mubr.msk.f32.mxu0 %vm586_vm14, %v2438_v43  ;;  %vm2819_vm5 = vmand %vm515_vm0, %vm3376_vm6  ;;  %vm530_vm6 = vcmp.ge.f32.partialorder %v526_v45, 0.0 }
  0xf8   : > { %vm583_vm7 = vmxor %vm2819_vm5, %vm3301_vm12 }
  0xf9   : > { %vm587_vm8 = vmand %vm2765_vm2, %vm583_vm7  ;;  %vm3382_vm2 = vcmp.ne.f32.partialorder %v2202_v52, 0.0  ;;  %v903_v52 = vld [vmem:[%s3249_s2 + $0x50] sm:$0xff] }
  0xfa   : > { %1916 = vmatmul.mubr.msk.f32.gmra.mxu0 %vm587_vm8, %v2493_v6  ;;  %vm2836_vm1 = vmand %vm528_vm10, %vm3379_vm4  ;;  %vm3383_vm8 = vcmp.ne.f32.partialorder %v2208_v54, 0.0  ;;  %1003 = vmatprep.mubr.f32.mxu1 %v903_v52  ;;  %v894_v54 = vld [vmem:[%s3249_s2 + $0x8] sm:$0xff] }
  0xfb   : > { %v3381_v29 = vsel %vm2836_vm1, 4294967295, %v3380_v29  ;;  %vm588_vm0 = vmxor %vm2836_vm1, %vm3301_vm12  ;;  %vm531_vm1 = vcmp.ge.f32.partialorder %v527_v24, 0.0 }
  0xfc   : > { %vm592_vm11 = vmand %vm2779_vm9, %vm588_vm0 }
  0xfd   : > { %1918 = vmatprep.mubr.msk.f32.mxu0 %vm592_vm11, %v2388_v26  ;;  %vm533_vm14 = vmand %vm529_vm3, %vm3382_vm2  ;;  %vm3384_vm3 = vcmp.ne.f32.partialorder %v2236_v14, 0.0 }
  0xfe   : > { %vm589_vm10 = vmxor %vm533_vm14, %vm3301_vm12 }
  0xff   : > { %vm593_vm7 = vmand %vm2792_vm15, %vm589_vm10  ;;  %vm1306_vm10 = vcmask 113664  }
 0x100   : > { %1919 = vmatmul.mubr.msk.f32.gmra.mxu0 %vm593_vm7, %v2380_v22  ;;  %vm534_vm4 = vmand %vm530_vm6, %vm3383_vm8  ;;  %vm3385_vm6 = vnez %v3381_v29  ;;  %vm1473_vm7 = vcmask 130048   ;;  %vm1480_vm8 = vcmask 128000  }
 0x101   : > { %vm590_vm9 = vmxor %vm534_vm4, %vm3301_vm12 }
 0x102   : > { %vm594_vm0 = vmand %vm2805_vm13, %vm590_vm9  ;;  %vm908_vm13 = vcmask 261120  }
 0x103   : > { %1921 = vmatprep.mubr.msk.f32.mxu0 %vm594_vm0, %v2438_v43  ;;  %vm535_vm11 = vmand %vm531_vm1, %vm3384_vm3  ;;  %vm1116_vm1 = vcmask 293888  }
 0x104   : > { %vm591_vm2 = vmxor %vm535_vm11, %vm3301_vm12  ;;  %vm2104_vm12 = vmmov 0  }
 0x105   : > { %vm595_vm15 = vmand %vm2819_vm5, %vm591_vm2  ;;  %vm1138_vm5 = vcmask 1043456  }
 0x106   : > { %1922 = vmatmul.mubr.msk.f32.gmra.mxu0 %vm595_vm15, %v2493_v6 }
 0x107   : > { %1924 = vmatprep.mubr.msk.f32.mxu0 %vm3385_vm6, %v2388_v26 }
 0x10a   : > { %1925 = vmatmul.mubr.msk.f32.gmra.mxu0 %vm533_vm14, %v2380_v22  ;;  %vm1270_vm14 = vcmask 121856  }
 0x10b   : > { %1927 = vmatprep.mubr.msk.f32.mxu0 %vm534_vm4, %v2438_v43 }
 0x10e   : > { %1928 = vmatmul.mubr.msk.f32.gmra.mxu0 %vm535_vm11, %v2493_v6 }
 0x10f   : > { %988 = vmatprep.mubr.f32.mxu0 %v894_v54 }
 0x173   : > { %v2877_v1 = vpop.f32.mrf.mxu0 }
 0x175   : > { %v2879_v14 = vpop.f32.mrf.mxu0 }
 0x17a   : > { %v2881_v34 = vpop.f32.mrf.mxu0 }
 0x17c   : > { %v2883_v56 = vpop.f32.mrf.mxu0 }
 0x17e   : > { %v2885_v58 = vpop.f32.mrf.mxu0 }
 0x180   : > { %v2887_v22 = vpop.f32.mrf.mxu0 }
 0x183   : > { %v1887_v26 = vpop.f32.mrf.mxu0 }
 0x185   : > { %v2889_v42 = vpop.f32.mrf.mxu0 }
 0x189   : > { %v1890_v43 = vpop.f32.mrf.mxu0 }
 0x18b   : > { %v754_v2 = vpop.f32.mrf.mxu0 }
 0x18d   : > { %v1893_v6 = vpop.f32.mrf.mxu0 }
 0x18f   : > { %v764_v30 = vpop.f32.mrf.mxu0 }
 0x191   : > { %v1896_v60 = vpop.f32.mrf.mxu0 }
 0x193   : > { %v774_v31 = vpop.f32.mrf.mxu0 }
 0x196   : > { %v1899_v48 = vpop.f32.mrf.mxu0 }
 0x198   : > { %v784_v33 = vpop.f32.mrf.mxu0 }
 0x19c   : > { %v2891_v37 = vpop.f32.mrf.mxu0 }
 0x19e   : > { %v2893_v38 = vpop.f32.mrf.mxu0 }
 0x1a2   : > { %v2895_v40 = vpop.f32.mrf.mxu0 }
 0x1a4   : > { %v2897_v41 = vpop.f32.mrf.mxu0 }
 0x1a8   : > { %v1908_v46 = vpop.f32.mrf.mxu0 }
 0x1aa   : > { %v814_v32 = vpop.f32.mrf.mxu0 }
 0x1ae   : > { %v1911_v49 = vpop.f32.mrf.mxu0 }
 0x1b0   : > { %v824_v51 = vpop.f32.mrf.mxu0 }
 0x1b4   : > { %v1914_v57 = vpop.f32.mrf.mxu0 }
 0x1b6   : > { %v834_v61 = vpop.f32.mrf.mxu0 }
 0x1ba   : > { %v1917_v62 = vpop.f32.mrf.mxu0 }
 0x1bc   : > { %v844_v63 = vpop.f32.mrf.mxu0 }
 0x1c0   : > { %v1920_v0 = vpop.f32.mrf.mxu0 }
 0x1c2   : > { %v854_v3 = vpop.f32.mrf.mxu0 }
 0x1c6   : > { %v1923_v4 = vpop.f32.mrf.mxu0 }
 0x1c7   : > { %1764 = vmatprep.subr.mxu0 %v1923_v4  ;;  %2015 = vmatprep.subr.mxu1 %v1923_v4  ;;  %v1337_v4 = vld [vmem:[%s3251_s4 + $0x10] sm:$0xff] }
 0x1c8   : > { %v864_v8 = vpop.f32.mrf.mxu0  ;;  %1765 = vmatpush3.msra.mxu0 %v1899_v48  ;;  %2031 = vmatpush3.msra.mxu1 %v1899_v48 }
 0x1c9   : > { %1766 = vmatprep.subr.mxu0 %v864_v8  ;;  %2016 = vmatprep.subr.mxu1 %v864_v8  ;;  %v1338_v8 = vld [vmem:[%s3251_s4 + $0x18] sm:$0xff] }
 0x1ca   : > { %1767 = vmatpush3.msra.mxu0 %v784_v33  ;;  %2032 = vmatpush3.msra.mxu1 %v784_v33  ;;  %v1926_v47 = vpop.f32.mrf.mxu0 }
 0x1cb   : > { %1768 = vmatprep.subr.mxu0 %v1920_v0  ;;  %2017 = vmatprep.subr.mxu1 %v1920_v0  ;;  %v1335_v0 = vld [vmem:[%s3251_s4] sm:$0xff] }
 0x1cc   : > { %1769 = vmatpush3.msra.mxu0 %v1896_v60  ;;  %2033 = vmatpush3.msra.mxu1 %v1896_v60  ;;  %v874_v10 = vpop.f32.mrf.mxu0 }
 0x1cd   : > { %1770 = vmatprep.subr.mxu0 %v854_v3  ;;  %2018 = vmatprep.subr.mxu1 %v854_v3  ;;  %v1336_v3 = vld [vmem:[%s3251_s4 + $0x8] sm:$0xff] }
 0x1ce   : > { %1771 = vmatpush3.msra.mxu0 %v774_v31  ;;  %2034 = vmatpush3.msra.mxu1 %v774_v31  ;;  %v1929_v12 = vpop.f32.mrf.mxu0 }
 0x1cf   : > { %1772 = vmatprep.subr.mxu0 %v1917_v62  ;;  %2019 = vmatprep.subr.mxu1 %v1917_v62  ;;  %v1109_v62 = vld [vmem:[%s3250_s3 + $0x28] sm:$0xff] }
 0x1d0   : > { %1773 = vmatpush3.msra.mxu0 %v1893_v6  ;;  %2035 = vmatpush3.msra.mxu1 %v1893_v6  ;;  %v884_v11 = vpop.f32.mrf.mxu0 }
 0x1d1   : > { %1774 = vmatprep.subr.mxu0 %v844_v63  ;;  %2020 = vmatprep.subr.mxu1 %v844_v63  ;;  %v1110_v63 = vld [vmem:[%s3250_s3 + $0x30] sm:$0x3f] }
 0x1d2   : > { %1775 = vmatpush3.msra.mxu0 %v764_v30  ;;  %2036 = vmatpush3.msra.mxu1 %v764_v30 }
 0x1d3   : > { %1776 = vmatprep.subr.mxu0 %v1914_v57  ;;  %2021 = vmatprep.subr.mxu1 %v1914_v57  ;;  %v1107_v57 = vld [vmem:[%s3250_s3 + $0x18] sm:$0xff] }
 0x1d4   : > { %1777 = vmatpush3.msra.mxu0 %v1890_v43  ;;  %2037 = vmatpush3.msra.mxu1 %v1890_v43 }
 0x1d5   : > { %1778 = vmatprep.subr.mxu0 %v834_v61  ;;  %2022 = vmatprep.subr.mxu1 %v834_v61  ;;  %v1108_v61 = vld [vmem:[%s3250_s3 + $0x20] sm:$0xff] }
 0x1d6   : > { %1779 = vmatpush3.msra.mxu0 %v754_v2  ;;  %2038 = vmatpush3.msra.mxu1 %v754_v2 }
 0x1d7   : > { %1780 = vmatprep.subr.mxu0 %v1911_v49  ;;  %2023 = vmatprep.subr.mxu1 %v1911_v49  ;;  %v1105_v49 = vld [vmem:[%s3250_s3 + $0x8] sm:$0xff] }
 0x1d8   : > { %1781 = vmatpush3.msra.mxu0 %v1887_v26  ;;  %2039 = vmatpush3.msra.mxu1 %v1887_v26 }
 0x1d9   : > { %1782 = vmatprep.subr.mxu0 %v824_v51  ;;  %2024 = vmatprep.subr.mxu1 %v824_v51  ;;  %v1106_v51 = vld [vmem:[%s3250_s3 + $0x10] sm:$0xff] }
 0x1da   : > { %1783 = vmatpush3.msra.mxu0 %v2889_v42  ;;  %2040 = vmatpush3.msra.mxu1 %v2889_v42 }
 0x1db   : > { %1784 = vmatprep.subr.mxu0 %v1908_v46  ;;  %2025 = vmatprep.subr.mxu1 %v1908_v46 }
 0x1dc   : > { %1785 = vmatpush3.msra.mxu0 %v2885_v58  ;;  %2041 = vmatpush3.msra.mxu1 %v2885_v58 }
 0x1dd   : > { %1786 = vmatprep.subr.mxu0 %v814_v32  ;;  %2026 = vmatprep.subr.mxu1 %v814_v32  ;;  %v1104_v32 = vld [vmem:[%s3250_s3] sm:$0xff] }
 0x1de   : > { %1787 = vmatpush3.msra.mxu0 %v2887_v22  ;;  %2042 = vmatpush3.msra.mxu1 %v2887_v22 }
 0x1df   : > { %1788 = vmatprep.subr.mxu0 %v2895_v40  ;;  %2027 = vmatprep.subr.mxu1 %v2895_v40 }
 0x1e0   : > { %1789 = vmatpush3.msra.mxu0 %v2881_v34  ;;  %2043 = vmatpush3.msra.mxu1 %v2881_v34 }
 0x1e1   : > { %1790 = vmatprep.subr.mxu0 %v2897_v41  ;;  %2028 = vmatprep.subr.mxu1 %v2897_v41 }
 0x1e2   : > { %1791 = vmatpush3.msra.mxu0 %v2883_v56  ;;  %2044 = vmatpush3.msra.mxu1 %v2883_v56 }
 0x1e3   : > { %1792 = vmatprep.subr.mxu0 %v2891_v37  ;;  %2029 = vmatprep.subr.mxu1 %v2891_v37 }
 0x1e4   : > { %1793 = vmatpush3.msra.mxu0 %v2877_v1  ;;  %2045 = vmatpush3.msra.mxu1 %v2877_v1 }
 0x1e5   : > { %1794 = vmatprep.subr.mxu0 %v2893_v38  ;;  %2030 = vmatprep.subr.mxu1 %v2893_v38 }
 0x1e6   : > { %1795 = vmatpush3.msra.mxu0 %v2879_v14  ;;  %2046 = vmatpush3.msra.mxu1 %v2879_v14 }
 0x1e7   : > { %1004 = vmatmul.mubr.f32.vlgmr.msra.gmra.mxu1 %v902_v23  ;;  %1930 = vmatprep.subr.mxu1 %v2103_v19  ;;  %v1341_v23 = vld [vmem:[%s3251_s4 + $0x30] sm:$0x3f] }
 0x1e8   : > { %1931 = vmatpush3.msra.mxu1 %v1929_v12  ;;  %1008 = vmatprep.mubr.f32.mxu1 %v906_v13 }
 0x1e9   : > { %1932 = vmatprep.subr.mxu1 %v2103_v19  ;;  %989 = vmatmul.mubr.f32.vlgmr.msra.gmra.mxu0 %v893_v39 }
 0x1ea   : > { %1933 = vmatpush3.msra.mxu1 %v884_v11  ;;  %993 = vmatprep.mubr.f32.mxu0 %v897_v55 }
 0x1eb   : > { %1009 = vmatmul.mubr.f32.gmra.mxu1 %v905_v53  ;;  %1934 = vmatprep.subr.mxu1 %v2103_v19 }
 0x1ec   : > { %1935 = vmatpush3.msra.mxu1 %v1926_v47  ;;  %1938 = vmatprep.mubr.msk.f32.mxu1 %vm2104_vm12, %v2103_v19  ;;  %v1339_v47 = vld [vmem:[%s3251_s4 + $0x20] sm:$0xff] }
 0x1ed   : > { %1936 = vmatprep.subr.mxu1 %v2103_v19  ;;  %994 = vmatmul.mubr.f32.gmra.mxu0 %v896_v16 }
 0x1ee   : > { %1937 = vmatpush3.msra.mxu1 %v874_v10  ;;  %998 = vmatprep.mubr.f32.mxu0 %v900_v5  ;;  %v1340_v10 = vld [vmem:[%s3251_s4 + $0x28] sm:$0xff] }
 0x1ef   : > { %1939 = vmatmul.mubr.msk.f32.vlgmr.msra.gmra.mxu1 %vm908_vm13, %v895_v21  ;;  %1953 = vmatprep.subr.mxu1 %v2103_v19 }
 0x1f0   : > { %1941 = vmatprep.mubr.msk.f32.mxu1 %vm2104_vm12, %v2103_v19 }
 0x1f1   : > { %999 = vmatmul.mubr.f32.gmra.mxu0 %v899_v20 }
 0x1f3   : > { %1942 = vmatmul.mubr.msk.f32.gmra.mxu1 %vm908_vm13, %v898_v35 }
 0x1f4   : > { %1944 = vmatprep.mubr.msk.f32.mxu1 %vm2104_vm12, %v2103_v19 }
 0x1f7   : > { %1945 = vmatmul.mubr.msk.f32.gmra.mxu1 %vm908_vm13, %v901_v7 }
 0x1f8   : > { %1947 = vmatprep.mubr.msk.f32.mxu1 %vm2104_vm12, %v2103_v19 }
 0x1fb   : > { %1948 = vmatmul.mubr.msk.f32.gmra.mxu1 %vm908_vm13, %v904_v15 }
 0x1fc   : > { %1950 = vmatprep.mubr.msk.f32.mxu1 %vm2104_vm12, %v2103_v19 }
 0x1ff   : > { %1951 = vmatmul.mubr.msk.f32.gmra.mxu1 %vm908_vm13, %v907_v50 }
 0x200   : > { %1963 = vmatprep.mubr.msk.f32.mxu1 %vm2104_vm12, %v2103_v19 }
 0x2a7   : > { %v1805_v36 = vpop.f32.mrf.mxu1 }
 0x2a9   : > { %v1806_v17 = vpop.f32.mrf.mxu1  ;;  %v1796_v59 = vpop.f32.mrf.mxu0 }
 0x2aa   : > { %v1807_v58 = vadd.f32 %v1806_v17, %v1805_v36 }
 0x2ab   : > { %v1808_v27 = vpop.f32.mrf.mxu1  ;;  %v1797_v9 = vpop.f32.mrf.mxu0 }
 0x2ac   : > { %v1798_v60 = vadd.f32 %v1797_v9, %v1796_v59 }
 0x2ad   : > { %v1809_v18 = vpop.f32.mrf.mxu1  ;;  %v1799_v44 = vpop.f32.mrf.mxu0 }
 0x2ae   : > { %v1810_v22 = vadd.f32 %v1809_v18, %v1808_v27 }
 0x2af   : > { %v1080_v25 = vpop.f32.mrf.mxu1  ;;  %v1800_v29 = vpop.f32.mrf.mxu0 }
 0x2b0   : > { %v1801_v2 = vadd.f32 %v1800_v29, %v1799_v44  ;;  %v1081_v38 = vadd.f32 %v1798_v60, %v1080_v25 }
 0x2b1   : > { %v1940_v28 = vpop.f32.mrf.mxu1  ;;  %v1802_v54 = vpop.f32.mrf.mxu0 }
 0x2b2   : > { %v1111_v46 = vmul.f32 %v1081_v38, %v1081_v38 }
 0x2b3   : > { %v1085_v45 = vpop.f32.mrf.mxu1  ;;  %v1803_v34 = vpop.f32.mrf.mxu0 }
 0x2b4   : > { %v1804_v26 = vadd.f32 %v1803_v34, %v1802_v54  ;;  %v1086_v37 = vadd.f32 %v1801_v2, %v1085_v45 }
 0x2b5   : > { %v1943_v24 = vpop.f32.mrf.mxu1 }
 0x2b6   : > { %v1112_v41 = vmul.f32 %v1086_v37, %v1086_v37 }
 0x2b7   : > { %v1090_v52 = vpop.f32.mrf.mxu1 }
 0x2b8   : > { %v1091_v48 = vadd.f32 %v1804_v26, %v1090_v52 }
 0x2b9   : > { %v1946_v1 = vpop.f32.mrf.mxu1 }
 0x2ba   : > { %v1113_v40 = vmul.f32 %v1091_v48, %v1091_v48 }
 0x2bb   : > { %v1095_v14 = vpop.f32.mrf.mxu1 }
 0x2bc   : > { %v1096_v43 = vadd.f32 %v1807_v58, %v1095_v14 }
 0x2bd   : > { %v1949_v56 = vpop.f32.mrf.mxu1 }
 0x2be   : > { %v1114_v33 = vmul.f32 %v1096_v43, %v1096_v43 }
 0x2bf   : > { %v1100_v42 = vpop.f32.mrf.mxu1 }
 0x2c0   : > { %v1101_v6 = vadd.f32 %v1810_v22, %v1100_v42 }
 0x2c1   : > { %v1952_v30 = vpop.f32.mrf.mxu1 }
 0x2c2   : > { %v1115_v31 = vmul.f32 %v1101_v6, %v1101_v6 }
 0x2c4   : > { %1954 = vmatpush3.msk.msra.mxu1 %vm1138_vm5, %v1115_v31 }
 0x2c5   : > { %1955 = vmatprep.subr.mxu1 %v2103_v19 }
 0x2c6   : > { %1956 = vmatpush3.msra.mxu1 %v1114_v33 }
 0x2c7   : > { %1957 = vmatprep.subr.mxu1 %v2103_v19 }
 0x2c8   : > { %1958 = vmatpush3.msra.mxu1 %v1113_v40 }
 0x2c9   : > { %1959 = vmatprep.subr.mxu1 %v2103_v19 }
 0x2ca   : > { %1960 = vmatpush3.msra.mxu1 %v1112_v41 }
 0x2cb   : > { %1961 = vmatprep.subr.mxu1 %v2103_v19 }
 0x2cc   : > { %1962 = vmatpush3.msra.mxu1 %v1111_v46 }
 0x2cd   : > { %1964 = vmatmul.mubr.msk.f32.vlgmr.msra.gmra.mxu1 %vm1116_vm1, %v1104_v32  ;;  %1984 = vmatprep.subr.mxu1 %v2103_v19 }
 0x2ce   : > { %1985 = vmatpush3.msk.msra.mxu1 %vm1138_vm5, %v1101_v6  ;;  %1966 = vmatprep.mubr.msk.f32.mxu1 %vm2104_vm12, %v2103_v19 }
 0x2cf   : > { %1986 = vmatprep.subr.mxu1 %v2103_v19 }
 0x2d0   : > { %1987 = vmatpush3.msra.mxu1 %v1096_v43 }
 0x2d1   : > { %1967 = vmatmul.mubr.msk.f32.gmra.mxu1 %vm1116_vm1, %v1105_v49  ;;  %1988 = vmatprep.subr.mxu1 %v2103_v19 }
 0x2d2   : > { %1989 = vmatpush3.msra.mxu1 %v1091_v48  ;;  %1969 = vmatprep.mubr.msk.f32.mxu1 %vm2104_vm12, %v2103_v19 }
 0x2d3   : > { %1990 = vmatprep.subr.mxu1 %v2103_v19 }
 0x2d4   : > { %1991 = vmatpush3.msra.mxu1 %v1086_v37 }
 0x2d5   : > { %1970 = vmatmul.mubr.msk.f32.gmra.mxu1 %vm1116_vm1, %v1106_v51  ;;  %1992 = vmatprep.subr.mxu1 %v2103_v19 }
 0x2d6   : > { %1993 = vmatpush3.msra.mxu1 %v1081_v38  ;;  %1972 = vmatprep.mubr.msk.f32.mxu1 %vm2104_vm12, %v2103_v19 }
 0x2d9   : > { %1973 = vmatmul.mubr.msk.f32.gmra.mxu1 %vm1116_vm1, %v1107_v57 }
 0x2da   : > { %1975 = vmatprep.mubr.msk.f32.mxu1 %vm2104_vm12, %v2103_v19 }
 0x2dd   : > { %1976 = vmatmul.mubr.msk.f32.gmra.mxu1 %vm1116_vm1, %v1108_v61 }
 0x2de   : > { %1978 = vmatprep.mubr.msk.f32.mxu1 %vm2104_vm12, %v2103_v19 }
 0x2e1   : > { %1979 = vmatmul.mubr.msk.f32.gmra.mxu1 %vm1116_vm1, %v1109_v62 }
 0x2e2   : > { %1981 = vmatprep.mubr.msk.f32.mxu1 %vm2104_vm12, %v2103_v19 }
 0x2e5   : > { %1982 = vmatmul.mubr.msk.f32.gmra.mxu1 %vm1116_vm1, %v1110_v63 }
 0x2e6   : > { %1994 = vmatprep.mubr.msk.f32.mxu1 %vm2104_vm12, %v2103_v19 }
 0x2e9   : > { %1995 = vmatmul.mubr.msk.f32.vlgmr.msra.gmra.mxu1 %vm1116_vm1, %v1335_v0 }
 0x2ea   : > { %1997 = vmatprep.mubr.msk.f32.mxu1 %vm2104_vm12, %v2103_v19 }
 0x2ed   : > { %1998 = vmatmul.mubr.msk.f32.gmra.mxu1 %vm1116_vm1, %v1336_v3 }
 0x2ee   : > { %2000 = vmatprep.mubr.msk.f32.mxu1 %vm2104_vm12, %v2103_v19 }
 0x2f1   : > { %2001 = vmatmul.mubr.msk.f32.gmra.mxu1 %vm1116_vm1, %v1337_v4 }
 0x2f2   : > { %2003 = vmatprep.mubr.msk.f32.mxu1 %vm2104_vm12, %v2103_v19 }
 0x2f5   : > { %2004 = vmatmul.mubr.msk.f32.gmra.mxu1 %vm1116_vm1, %v1338_v8 }
 0x2f6   : > { %2006 = vmatprep.mubr.msk.f32.mxu1 %vm2104_vm12, %v2103_v19 }
 0x2f9   : > { %2007 = vmatmul.mubr.msk.f32.gmra.mxu1 %vm1116_vm1, %v1339_v47 }
 0x2fa   : > { %2009 = vmatprep.mubr.msk.f32.mxu1 %vm2104_vm12, %v2103_v19 }
 0x2fd   : > { %2010 = vmatmul.mubr.msk.f32.gmra.mxu1 %vm1116_vm1, %v1340_v10 }
 0x2fe   : > { %2012 = vmatprep.mubr.msk.f32.mxu1 %vm2104_vm12, %v2103_v19 }
 0x301   : > { %2013 = vmatmul.mubr.msk.f32.gmra.mxu1 %vm1116_vm1, %v1341_v23 }
 0x38d   : > { %v1208_v12 = vpop.f32.mrf.mxu1 }
 0x38e   : > { %1285 = vrot.lane.b32.xlu1 %v1208_v12, %s2105_s27  ;;  %1249 = vrot.lane.b32.xlu0 %v1208_v12, %s2100_s13 }
 0x38f   : > { %v1965_v13 = vpop.f32.mrf.mxu1 }
 0x391   : > { %v3077_v39 = vpop.f32.mrf.mxu1 }
 0x392   : > { %1287 = vrot.lane.b32.xlu0 %v3077_v39, %s2105_s27  ;;  %1251 = vrot.lane.b32.xlu1 %v3077_v39, %s2100_s13 }
 0x393   : > { %v1968_v19 = vpop.f32.mrf.mxu1 }
 0x395   : > { %v3083_v55 = vpop.f32.mrf.mxu1 }
 0x396   : > { %1289 = vrot.lane.b32.xlu1 %v3083_v55, %s2105_s27  ;;  %1253 = vrot.lane.b32.xlu0 %v3083_v55, %s2100_s13 }
 0x397   : > { %v1971_v53 = vpop.f32.mrf.mxu1 }
 0x399   : > { %v3089_v11 = vpop.f32.mrf.mxu1 }
 0x39a   : > { %1291 = vrot.lane.b32.xlu0 %v3089_v11, %s2105_s27  ;;  %1255 = vrot.lane.b32.xlu1 %v3089_v11, %s2100_s13 }
 0x39b   : > { %v1974_v16 = vpop.f32.mrf.mxu1 }
 0x39d   : > { %v3095_v5 = vpop.f32.mrf.mxu1 }
 0x39e   : > { %1293 = vrot.lane.b32.xlu1 %v3095_v5, %s2105_s27  ;;  %1257 = vrot.lane.b32.xlu0 %v3095_v5, %s2100_s13 }
 0x39f   : > { %v1977_v21 = vpop.f32.mrf.mxu1 }
 0x3a1   : > { %v3101_v20 = vpop.f32.mrf.mxu1 }
 0x3a2   : > { %1295 = vrot.lane.b32.xlu0 %v3101_v20, %s2105_s27  ;;  %1259 = vrot.lane.b32.xlu1 %v3101_v20, %s2100_s13 }
 0x3a3   : > { %v1980_v35 = vpop.f32.mrf.mxu1 }
 0x3a5   : > { %v3107_v7 = vpop.f32.mrf.mxu1 }
 0x3a6   : > { %1297 = vrot.lane.b32.xlu1 %v3107_v7, %s2105_s27  ;;  %1261 = vrot.lane.b32.xlu0 %v3107_v7, %s2100_s13 }
 0x3a7   : > { %v1983_v15 = vpop.f32.mrf.mxu1 }
 0x3a9   : > { %v3113_v50 = vpop.f32.mrf.mxu1 }
 0x3aa   : > { %1532 = vrot.lane.b32.xlu1 %v3113_v50, %s2105_s27  ;;  %1489 = vrot.lane.b32.xlu0 %v3113_v50, %s2100_s13 }
 0x3ab   : > { %v1996_v36 = vpop.f32.mrf.mxu1 }
 0x3ad   : > { %v3119_v17 = vpop.f32.mrf.mxu1 }
 0x3ae   : > { %1534 = vrot.lane.b32.xlu0 %v3119_v17, %s2105_s27  ;;  %1491 = vrot.lane.b32.xlu1 %v3119_v17, %s2100_s13 }
 0x3af   : > { %v1999_v59 = vpop.f32.mrf.mxu1 }
 0x3b1   : > { %v3125_v27 = vpop.f32.mrf.mxu1 }
 0x3b2   : > { %1536 = vrot.lane.b32.xlu1 %v3125_v27, %s2105_s27  ;;  %1493 = vrot.lane.b32.xlu0 %v3125_v27, %s2100_s13 }
 0x3b3   : > { %v2002_v9 = vpop.f32.mrf.mxu1 }
 0x3b5   : > { %v3131_v18 = vpop.f32.mrf.mxu1 }
 0x3b6   : > { %1538 = vrot.lane.b32.xlu0 %v3131_v18, %s2105_s27  ;;  %1495 = vrot.lane.b32.xlu1 %v3131_v18, %s2100_s13 }
 0x3b7   : > { %v2005_v25 = vpop.f32.mrf.mxu1 }
 0x3b9   : > { %v3137_v44 = vpop.f32.mrf.mxu1 }
 0x3ba   : > { %1540 = vrot.lane.b32.xlu1 %v3137_v44, %s2105_s27  ;;  %1497 = vrot.lane.b32.xlu0 %v3137_v44, %s2100_s13 }
 0x3bb   : > { %v2008_v28 = vpop.f32.mrf.mxu1 }
 0x3bd   : > { %v3143_v45 = vpop.f32.mrf.mxu1 }
 0x3be   : > { %1499 = vrot.lane.b32.xlu1 %v3143_v45, %s2100_s13 }
 0x3bf   : > { %v2011_v29 = vpop.f32.mrf.mxu1 }
 0x3c1   : > { %v3147_v24 = vpop.f32.mrf.mxu1 }
 0x3c2   : > { %1544 = vrot.lane.b32.xlu1 %v3147_v24, %s2105_s27  ;;  %1501 = vrot.lane.b32.xlu0 %v3147_v24, %s2100_s13  ;;  %s2047_s13 = smul.u32 168, %s3387_s19 }
 0x3c3   : > { %v2014_v52 = vpop.f32.mrf.mxu1 }
 0x3c4   : > { %s3173_s30 = scalar_lea.vmem %s3252_s5, %s2047_s13 }
 0x3c6   : > { %1542 = vrot.lane.b32.xlu0 %v3143_v45, %s2105_s27 }
 0x400   : > { %v1286_v54 = vpop.permute.xlu1 %1285  ;;  %v1250_v1 = vpop.permute.xlu0 %1249 }
 0x401   : > { %v1271_v14 = vsel %vm1270_vm14, %v1250_v1, 0.0  ;;  %v1307_v56 = vsel %vm1306_vm10, %v1286_v54, 0.0 }
 0x402   : > { %v1278_v34 = vadd.f32 %v1271_v14, %v1208_v12 }
 0x404   : > { %v1314_v58 = vadd.f32 %v1307_v56, %v1278_v34  ;;  %v1288_v22 = vpop.permute.xlu0 %1287  ;;  %v1252_v26 = vpop.permute.xlu1 %1251 }
 0x405   : > { %v1272_v42 = vsel %vm1270_vm14, %v1252_v26, 0.0  ;;  %v1308_v6 = vsel %vm1306_vm10, %v1288_v22, 0.0 }
 0x406   : > { %v1321_v43 = vadd.f32 1e-10, %v1314_v58  ;;  %v1279_v2 = vadd.f32 %v1272_v42, %v3077_v39 }
 0x408   : > { %2078 = vrsqrt.f32 %v1321_v43  ;;  %v1315_v30 = vadd.f32 %v1308_v6, %v1279_v2  ;;  %v1290_v60 = vpop.permute.xlu1 %1289  ;;  %v1254_v31 = vpop.permute.xlu0 %1253 }
 0x409   : > { %v1273_v48 = vsel %vm1270_vm14, %v1254_v31, 0.0  ;;  %v1309_v38 = vsel %vm1306_vm10, %v1290_v60, 0.0 }
 0x40a   : > { %v1322_v33 = vadd.f32 1e-10, %v1315_v30  ;;  %v1280_v37 = vadd.f32 %v1273_v48, %v3083_v55 }
 0x40c   : > { %2080 = vrsqrt.f32 %v1322_v33  ;;  %v1316_v40 = vadd.f32 %v1309_v38, %v1280_v37  ;;  %v1292_v41 = vpop.permute.xlu0 %1291  ;;  %v1256_v46 = vpop.permute.xlu1 %1255 }
 0x40d   : > { %v1274_v32 = vsel %vm1270_vm14, %v1256_v46, 0.0  ;;  %v1310_v57 = vsel %vm1306_vm10, %v1292_v41, 0.0 }
 0x40e   : > { %v1323_v49 = vadd.f32 1e-10, %v1316_v40  ;;  %v1281_v51 = vadd.f32 %v1274_v32, %v3089_v11 }
 0x410   : > { %2082 = vrsqrt.f32 %v1323_v49  ;;  %v1317_v61 = vadd.f32 %v1310_v57, %v1281_v51  ;;  %v1294_v62 = vpop.permute.xlu1 %1293  ;;  %v1258_v63 = vpop.permute.xlu0 %1257 }
 0x411   : > { %v1275_v0 = vsel %vm1270_vm14, %v1258_v63, 0.0  ;;  %v1311_v8 = vsel %vm1306_vm10, %v1294_v62, 0.0 }
 0x412   : > { %v1324_v3 = vadd.f32 1e-10, %v1317_v61  ;;  %v1282_v4 = vadd.f32 %v1275_v0, %v3095_v5 }
 0x414   : > { %2084 = vrsqrt.f32 %v1324_v3  ;;  %v1318_v47 = vadd.f32 %v1311_v8, %v1282_v4  ;;  %v1296_v10 = vpop.permute.xlu0 %1295  ;;  %v1260_v23 = vpop.permute.xlu1 %1259 }
 0x415   : > { %v2079_v12 = vpop.eup %2078  ;;  %v1276_v13 = vsel %vm1270_vm14, %v1260_v23, 0.0  ;;  %v1312_v53 = vsel %vm1306_vm10, %v1296_v10, 0.0 }
 0x416   : > { %v1466_v39 = vmul.f32 %v2079_v12, %v3113_v50  ;;  %v1325_v19 = vadd.f32 1e-10, %v1318_v47  ;;  %v1283_v55 = vadd.f32 %v1276_v13, %v3101_v20 }
 0x418   : > { %1474 = vst.msk [vmem:[%s3173_s30] sm:$0xff] %vm1473_vm7, %v1466_v39  ;;  %2086 = vrsqrt.f32 %v1325_v19  ;;  %v1319_v11 = vadd.f32 %v1312_v53, %v1283_v55  ;;  %v1298_v16 = vpop.permute.xlu1 %1297  ;;  %v1262_v5 = vpop.permute.xlu0 %1261 }
 0x419   : > { %v2081_v21 = vpop.eup %2080  ;;  %v1277_v35 = vsel %vm1270_vm14, %v1262_v5, 0.0  ;;  %v1313_v20 = vsel %vm1306_vm10, %v1298_v16, 0.0 }
 0x41a   : > { %v1467_v15 = vmul.f32 %v2081_v21, %v3119_v17  ;;  %v1326_v36 = vadd.f32 1e-10, %v1319_v11  ;;  %v1284_v50 = vadd.f32 %v1277_v35, %v3107_v7 }
 0x41c   : > { %1475 = vst.msk [vmem:[%s3173_s30 + $0x8] sm:$0xff] %vm1473_vm7, %v1467_v15  ;;  %2088 = vrsqrt.f32 %v1326_v36  ;;  %v1320_v59 = vadd.f32 %v1313_v20, %v1284_v50  ;;  %v1533_v9 = vpop.permute.xlu1 %1532  ;;  %v1490_v25 = vpop.permute.xlu0 %1489 }
 0x41d   : > { %v2083_v28 = vpop.eup %2082  ;;  %v1553_v29 = vsel %vm1306_vm10, %v1533_v9, 0.0  ;;  %v1510_v52 = vsel %vm1270_vm14, %v1490_v25, 0.0 }
 0x41e   : > { %v1468_v17 = vmul.f32 %v2083_v28, %v3125_v27  ;;  %v1327_v54 = vadd.f32 1e-10, %v1320_v59  ;;  %v1560_v7 = vmul.f32 %v2079_v12, %v1553_v29  ;;  %v1517_v1 = vmul.f32 %v2079_v12, %v1510_v52 }
 0x420   : > { %1476 = vst.msk [vmem:[%s3173_s30 + $0x10] sm:$0xff] %vm1473_vm7, %v1468_v17  ;;  %2090 = vrsqrt.f32 %v1327_v54  ;;  %1702 = vst.msk [vmem:[%s3173_s30 + $0x70] sm:$0xff] %vm1473_vm7, %v1560_v7  ;;  %v1535_v14 = vpop.permute.xlu0 %1534  ;;  %v1492_v34 = vpop.permute.xlu1 %1491 }
 0x421   : > { %1695 = vst.msk [vmem:[%s3173_s30 + $0x38] sm:$0xff] %vm1473_vm7, %v1517_v1  ;;  %v2085_v56 = vpop.eup %2084  ;;  %v1554_v58 = vsel %vm1306_vm10, %v1535_v14, 0.0  ;;  %v1511_v27 = vsel %vm1270_vm14, %v1492_v34, 0.0 }
 0x422   : > { %v1469_v22 = vmul.f32 %v2085_v56, %v3131_v18  ;;  %v1561_v26 = vmul.f32 %v2081_v21, %v1554_v58  ;;  %v1518_v42 = vmul.f32 %v2081_v21, %v1511_v27 }
 0x424   : > { %1477 = vst.msk [vmem:[%s3173_s30 + $0x18] sm:$0xff] %vm1473_vm7, %v1469_v22  ;;  %1703 = vst.msk [vmem:[%s3173_s30 + $0x78] sm:$0xff] %vm1473_vm7, %v1561_v26  ;;  %v1537_v43 = vpop.permute.xlu1 %1536  ;;  %v1494_v2 = vpop.permute.xlu0 %1493 }
 0x425   : > { %1696 = vst.msk [vmem:[%s3173_s30 + $0x40] sm:$0xff] %vm1473_vm7, %v1518_v42  ;;  %v2087_v6 = vpop.eup %2086  ;;  %v1555_v30 = vsel %vm1306_vm10, %v1537_v43, 0.0  ;;  %v1512_v60 = vsel %vm1270_vm14, %v1494_v2, 0.0 }
 0x426   : > { %v1470_v18 = vmul.f32 %v2087_v6, %v3137_v44  ;;  %v1562_v31 = vmul.f32 %v2083_v28, %v1555_v30  ;;  %v1519_v48 = vmul.f32 %v2083_v28, %v1512_v60 }
 0x428   : > { %1478 = vst.msk [vmem:[%s3173_s30 + $0x20] sm:$0xff] %vm1473_vm7, %v1470_v18  ;;  %1704 = vst.msk [vmem:[%s3173_s30 + $0x80] sm:$0xff] %vm1473_vm7, %v1562_v31  ;;  %v1539_v33 = vpop.permute.xlu0 %1538  ;;  %v1496_v37 = vpop.permute.xlu1 %1495 }
 0x429   : > { %1697 = vst.msk [vmem:[%s3173_s30 + $0x48] sm:$0xff] %vm1473_vm7, %v1519_v48  ;;  %v2089_v38 = vpop.eup %2088  ;;  %v1556_v40 = vsel %vm1306_vm10, %v1539_v33, 0.0  ;;  %v1513_v41 = vsel %vm1270_vm14, %v1496_v37, 0.0 }
 0x42a   : > { %v1471_v46 = vmul.f32 %v2089_v38, %v3143_v45  ;;  %v1563_v44 = vmul.f32 %v2085_v56, %v1556_v40  ;;  %v1520_v32 = vmul.f32 %v2085_v56, %v1513_v41 }
 0x42c   : > { %1479 = vst.msk [vmem:[%s3173_s30 + $0x28] sm:$0xff] %vm1473_vm7, %v1471_v46  ;;  %1705 = vst.msk [vmem:[%s3173_s30 + $0x88] sm:$0xff] %vm1473_vm7, %v1563_v44  ;;  %v1541_v49 = vpop.permute.xlu1 %1540  ;;  %v1498_v51 = vpop.permute.xlu0 %1497 }
 0x42d   : > { %1698 = vst.msk [vmem:[%s3173_s30 + $0x50] sm:$0xff] %vm1473_vm7, %v1520_v32  ;;  %v2091_v57 = vpop.eup %2090  ;;  %v1557_v61 = vsel %vm1306_vm10, %v1541_v49, 0.0  ;;  %v1514_v62 = vsel %vm1270_vm14, %v1498_v51, 0.0 }
 0x42e   : > { %v1564_v45 = vmul.f32 %v2087_v6, %v1557_v61  ;;  %v1521_v63 = vmul.f32 %v2087_v6, %v1514_v62  ;;  %v1472_v0 = vmul.f32 %v2091_v57, %v3147_v24 }
 0x430   : > { %1706 = vst.msk [vmem:[%s3173_s30 + $0x90] sm:$0xff] %vm1473_vm7, %v1564_v45  ;;  %1699 = vst.msk [vmem:[%s3173_s30 + $0x58] sm:$0xff] %vm1473_vm7, %v1521_v63  ;;  %v1500_v3 = vpop.permute.xlu1 %1499 }
 0x431   : > { %1481 = vst.msk [vmem:[%s3173_s30 + $0x30] sm:$0x3f] %vm1480_vm8, %v1472_v0  ;;  %v1515_v4 = vsel %vm1270_vm14, %v1500_v3, 0.0 }
 0x432   : > { %v1522_v8 = vmul.f32 %v2089_v38, %v1515_v4 }
 0x434   : > { %1700 = vst.msk [vmem:[%s3173_s30 + $0x60] sm:$0xff] %vm1473_vm7, %v1522_v8  ;;  %v1545_v47 = vpop.permute.xlu1 %1544  ;;  %v1502_v10 = vpop.permute.xlu0 %1501 }
 0x435   : > { %v1559_v23 = vsel %vm1306_vm10, %v1545_v47, 0.0  ;;  %v1516_v12 = vsel %vm1270_vm14, %v1502_v10, 0.0 }
 0x436   : > { %v1566_v24 = vmul.f32 %v2091_v57, %v1559_v23  ;;  %v1523_v13 = vmul.f32 %v2091_v57, %v1516_v12 }
 0x438   : > { %1708 = vst.msk [vmem:[%s3173_s30 + $0xa0] sm:$0x3f] %vm1480_vm8, %v1566_v24  ;;  %1701 = vst.msk [vmem:[%s3173_s30 + $0x68] sm:$0x3f] %vm1480_vm8, %v1523_v13  ;;  %v1543_v39 = vpop.permute.xlu0 %1542 }
 0x439   : > { %v1558_v19 = vsel %vm1306_vm10, %v1543_v39, 0.0 }
 0x43a   : > { %v1565_v55 = vmul.f32 %v2089_v38, %v1558_v19 }
 0x43c   : > { %1707 = vst.msk [vmem:[%s3173_s30 + $0x98] sm:$0xff] %vm1473_vm7, %v1565_v55 }
 0x43d PF: > { %s15_s18 = sadd.s32 1, %s2098_s18  }
 0x43e   : > { %p12_p4 = scmp.ge.s32.totalorder %s15_s18, 4  }
 0x440   :  { %14 = sbr.rel (!%p12_p4) target bundleno = 1 (0x1), region = 72 }

</bundles_post_ra>
